<compile_context>
chip_gen: v7x
topology: tpu7x:2x2x1
jax: 0.10.0
libtpu: 0.0.40
codegen_flags: <defaults>
</compile_context>

<pallas_src>
import functools

import numpy as np
import jax
import jax.numpy as jnp
from jax import lax
from jax.experimental import pallas as pl
from jax.experimental.pallas import tpu as pltpu

EPS = 1e-5  # BatchNorm eps (PyTorch default)


# --------------------------------------------------------------------------
# Fused kernel.
#
# Shapes (all static):
#   x1_ref   : (N*C1, H1*W1)      x1 flattened, NCHW row order
#   x2_ref   : (N*C2, H*W)        x2 flattened, NCHW row order
#   upt_ref  : (H1*W1, LE)        [conv-pad o F.pad o bilinear-up]^T (Kron)
#   padt_ref : (H*W,   LE)        [conv-pad]^T (0/1 Kron scatter)
#   w1a_ref  : (N*Cmid, 9*N*C2)   conv1 weights, x2-channel part, block-diag over N
#   w1b_ref  : (N*Cmid, 9*N*C1)   conv1 weights, x1-channel part
#   w2_ref   : (N*Cout, 9*N*Cmid) conv2 weights, block-diag over N
#   g*/b*    : (C, 1)             BN affine params
#   vmask_ref: (1, H*Wp)          1.0 on valid output columns (w < W)
#   o_ref    : (N, Cout, H*Wp)    output in padded-width coords (2 junk cols/row)
#
# LE = (H+2)*(W+2) + 2 : padded-flat length, +2 so every tap slice is in-bounds.
# --------------------------------------------------------------------------
def _up_fused_kernel(x1_ref, x2_ref, upt_ref, padt_ref,
                     w1a_ref, w1b_ref, w2_ref,
                     g1_ref, b1_ref, g2_ref, b2_ref, vmask_ref,
                     o_ref, *, N, Cmid, Cout, H, W):
    f32 = jnp.float32
    Wp = W + 2
    HWp = H * Wp
    LE = (H + 2) * Wp + 2
    offs = [dy * Wp + dx for dy in range(3) for dx in range(3)]
    cnt = float(N * H * W)

    vm = vmask_ref[...][None]                    # (1, 1, HWp)

    def masked_moments(a):                       # a: (N, C, HWp)
        s = jnp.sum(jnp.sum(a * vm, axis=2, keepdims=True), axis=0, keepdims=True)
        mu = s / cnt
        d = a - mu
        v = jnp.sum(jnp.sum(d * d * vm, axis=2, keepdims=True),
                    axis=0, keepdims=True) / cnt
        return d, v

    # ---- x1: bilinear upsample + F.pad + conv pad, as one matmul ----------
    x1p = jnp.dot(x1_ref[...], upt_ref[...], preferred_element_type=f32)   # (N*C1, LE)
    # ---- x2: conv zero-pad, as one matmul ---------------------------------
    x2p = jnp.dot(x2_ref[...], padt_ref[...], preferred_element_type=f32)  # (N*C2, LE)

    # ---- conv1: im2col (9 lane-shifted tap slices on the contraction axis) --
    p2 = jnp.concatenate([x2p[:, o:o + HWp] for o in offs], axis=0)  # (9*N*C2, HWp)
    p1 = jnp.concatenate([x1p[:, o:o + HWp] for o in offs], axis=0)  # (9*N*C1, HWp)
    acc1 = (jnp.dot(w1a_ref[...], p2, preferred_element_type=f32)
            + jnp.dot(w1b_ref[...], p1, preferred_element_type=f32))  # (N*Cmid, HWp)

    # ---- BN1 (masked batch stats) + ReLU; junk columns forced to 0 --------
    a1 = acc1.reshape(N, Cmid, HWp)
    d1, var1 = masked_moments(a1)
    g1 = g1_ref[...][None]                       # (1, Cmid, 1)
    b1 = b1_ref[...][None]
    h1 = jnp.maximum(d1 * (g1 * lax.rsqrt(var1 + EPS)) + b1, 0.0) * vm

    # ---- re-pad intermediate: head/tail zero concat (no scratch, no zero-fill)
    zh = jnp.zeros((N, Cmid, Wp + 1), f32)
    zt = jnp.zeros((N, Cmid, LE - (Wp + 1) - HWp), f32)
    hflat = jnp.concatenate([zh, h1, zt], axis=-1).reshape(N * Cmid, LE)

    # ---- conv2: single large-K im2col dot ----------------------------------
    ph = jnp.concatenate([hflat[:, o:o + HWp] for o in offs], axis=0)  # (9*N*Cmid, HWp)
    acc2 = jnp.dot(w2_ref[...], ph, preferred_element_type=f32)        # (N*Cout, HWp)

    # ---- BN2 + ReLU, lane-dense store --------------------------------------
    a2 = acc2.reshape(N, Cout, HWp)
    d2, var2 = masked_moments(a2)
    g2 = g2_ref[...][None]
    b2 = b2_ref[...][None]
    o_ref[...] = jnp.maximum(d2 * (g2 * lax.rsqrt(var2 + EPS)) + b2, 0.0)


# --------------------------------------------------------------------------
# Static (numpy) operator matrices.
# --------------------------------------------------------------------------
def _interp_pad_matrix(n_in, n_out_target):
    """(n_out_target, n_in) = [zero-pad to target] @ [bilinear x2, align_corners].

    Assumes n_in >= 2 and n_out_target >= 2*n_in (true for UNet decoder use)."""
    n_up = 2 * n_in
    s = np.arange(n_up) * (n_in - 1) / (n_up - 1)
    i0 = np.clip(np.floor(s).astype(np.int64), 0, n_in - 2)
    f = (s - i0).astype(np.float32)
    U = np.zeros((n_up, n_in), np.float32)
    U[np.arange(n_up), i0] += 1.0 - f
    U[np.arange(n_up), i0 + 1] += f
    lo = (n_out_target - n_up) // 2
    P = np.zeros((n_out_target, n_in), np.float32)
    P[lo:lo + n_up, :] = U
    return P


def _pad_matrix(n, pad):
    P = np.zeros((n + 2 * pad, n), np.float32)
    P[pad:pad + n, :] = np.eye(n, dtype=np.float32)
    return P


# --------------------------------------------------------------------------
# Wrapper: NCHW in, NCHW out, one pallas_call.
# --------------------------------------------------------------------------
def up_forward(x1, x2, params):
    """x1: (N, C1, H1, W1); x2: (N, C2, H2, W2) -> (N, Cout, H2, W2), all NCHW."""
    N, C1, H1, W1 = x1.shape
    _, C2, H2, W2 = x2.shape
    Hp, Wp = H2 + 2, W2 + 2
    HWp = H2 * Wp
    LE = Hp * Wp + 2            # +2 so every tap slice [off, off+HWp) is in-bounds

    w1, g1, b1 = params["w1"], params["g1"], params["b1"]
    w2, g2, b2 = params["w2"], params["g2"], params["b2"]
    Cmid, Cin = w1.shape[0], w1.shape[1]
    Cout = w2.shape[0]
    assert Cin == C1 + C2

    # ---- static interpolation / padding operators (built at trace time) ----
    PHp = _interp_pad_matrix(H1, Hp)          # upsample + F.pad + conv-pad (rows)
    PWp = _interp_pad_matrix(W1, Wp)
    upt = np.zeros((H1 * W1, LE), np.float32)
    upt[:, :Hp * Wp] = np.kron(PHp, PWp).T
    padt = np.zeros((H2 * W2, LE), np.float32)
    padt[:, :Hp * Wp] = np.kron(_pad_matrix(H2, 1), _pad_matrix(W2, 1)).T
    vmask = (np.arange(HWp) % Wp < W2).astype(np.float32).reshape(1, HWp)

    # ---- weights: fold channel-concat split + batch block-diagonal in ------
    eyeN = jnp.eye(N, dtype=jnp.float32)
    w1_r = jnp.transpose(w1.astype(jnp.float32), (2, 3, 1, 0)).reshape(9, Cin, Cmid)
    w1a = jnp.einsum("nm,tcd->ndtmc", eyeN, w1_r[:, :C2, :]).reshape(N * Cmid, 9 * N * C2)
    w1b = jnp.einsum("nm,tcd->ndtmc", eyeN, w1_r[:, C2:, :]).reshape(N * Cmid, 9 * N * C1)
    w2_r = jnp.transpose(w2.astype(jnp.float32), (2, 3, 1, 0)).reshape(9, Cmid, Cout)
    w2b = jnp.einsum("nm,tcd->ndtmc", eyeN, w2_r).reshape(N * Cout, 9 * N * Cmid)

    # NCHW -> flattened rows (free reshape, no transpose).
    x1f = x1.reshape(N * C1, H1 * W1).astype(jnp.float32)
    x2f = x2.reshape(N * C2, H2 * W2).astype(jnp.float32)

    kernel = functools.partial(_up_fused_kernel, N=N, Cmid=Cmid, Cout=Cout,
                               H=H2, W=W2)
    vspec = pl.BlockSpec(memory_space=pltpu.MemorySpace.VMEM)
    out = pl.pallas_call(
        kernel,
        out_shape=jax.ShapeDtypeStruct((N, Cout, HWp), jnp.float32),
        in_specs=[vspec] * 12,
        out_specs=vspec,
        compiler_params=pltpu.CompilerParams(vmem_limit_bytes=32 * 1024 * 1024),
    )(x1f, x2f, jnp.asarray(upt), jnp.asarray(padt),
      w1a, w1b, w2b,
      g1.reshape(Cmid, 1).astype(jnp.float32), b1.reshape(Cmid, 1).astype(jnp.float32),
      g2.reshape(Cout, 1).astype(jnp.float32), b2.reshape(Cout, 1).astype(jnp.float32),
      jnp.asarray(vmask))

    # drop the 2 wrap columns per row; result is already NCHW-ordered.
    return out.reshape(N, Cout, H2, Wp)[:, :, :, :W2]


# --------------------------------------------------------------------------
# Pure-JAX reference (NCHW, mirrors the PyTorch forward) for verification.
# --------------------------------------------------------------------------
def ref_up_forward(x1, x2, params):
    _, _, H2, W2 = x2.shape

    def up2(x):
        _, _, H, W = x.shape
        Ho, Wo = 2 * H, 2 * W
        sy = jnp.arange(Ho) * (H - 1) / (Ho - 1)
        sx = jnp.arange(Wo) * (W - 1) / (Wo - 1)
        y0 = jnp.clip(jnp.floor(sy).astype(jnp.int32), 0, H - 2)
        x0 = jnp.clip(jnp.floor(sx).astype(jnp.int32), 0, W - 2)
        fy = (sy - y0)[None, None, :, None]
        fx = (sx - x0)[None, None, None, :]
        g = lambda yi, xi: x[:, :, yi, :][:, :, :, xi]
        return (g(y0, x0) * (1 - fy) * (1 - fx) + g(y0, x0 + 1) * (1 - fy) * fx
                + g(y0 + 1, x0) * fy * (1 - fx) + g(y0 + 1, x0 + 1) * fy * fx)

    x1u = up2(x1.astype(jnp.float32))
    dy_, dx_ = H2 - x1u.shape[2], W2 - x1u.shape[3]
    x1u = jnp.pad(x1u, ((0, 0), (0, 0),
                        (dy_ // 2, dy_ - dy_ // 2),
                        (dx_ // 2, dx_ - dx_ // 2)))
    x = jnp.concatenate([x2.astype(jnp.float32), x1u], axis=1)

    def conv_bn_relu(x, w, g, b):
        y = lax.conv_general_dilated(x, w, (1, 1), ((1, 1), (1, 1)),
                                     dimension_numbers=("NCHW", "OIHW", "NCHW"))
        mu = jnp.mean(y, axis=(0, 2, 3), keepdims=True)
        var = jnp.mean((y - mu) ** 2, axis=(0, 2, 3), keepdims=True)
        y = (y - mu) * (g.reshape(1, -1, 1, 1) * lax.rsqrt(var + EPS)) \
            + b.reshape(1, -1, 1, 1)
        return jnp.maximum(y, 0.0)

    x = conv_bn_relu(x, params["w1"], params["g1"], params["b1"])
    x = conv_bn_relu(x, params["w2"], params["g2"], params["b2"])
    return x


if __name__ == "__main__":
    key = jax.random.PRNGKey(0)
    k1, k2, kw1, kw2, kg1, kb1, kg2, kb2 = jax.random.split(key, 8)

    # Up(in_channels=8, out_channels=8, bilinear=True); DoubleConv(8, 8, 4).
    in_channels, out_channels = 8, 8
    mid_channels = in_channels // 2
    N = 2
    C1 = C2 = in_channels // 2          # UNet: x1 and x2 each carry in//2 channels
    H1 = W1 = 7                         # x1 -> upsampled to 14 -> padded to 16
    H2 = W2 = 16                        # x2 spatial size

    x1 = jax.random.normal(k1, (N, C1, H1, W1), jnp.float32)
    x2 = jax.random.normal(k2, (N, C2, H2, W2), jnp.float32)

    params = {
        "w1": 0.2 * jax.random.normal(kw1, (mid_channels, in_channels, 3, 3), jnp.float32),
        "g1": 1.0 + 0.1 * jax.random.normal(kg1, (mid_channels,), jnp.float32),
        "b1": 0.1 * jax.random.normal(kb1, (mid_channels,), jnp.float32),
        "w2": 0.2 * jax.random.normal(kw2, (out_channels, mid_channels, 3, 3), jnp.float32),
        "g2": 1.0 + 0.1 * jax.random.normal(kg2, (out_channels,), jnp.float32),
        "b2": 0.1 * jax.random.normal(kb2, (out_channels,), jnp.float32),
    }

    out = jax.block_until_ready(jax.jit(up_forward)(x1, x2, params))
    ref = jax.block_until_ready(ref_up_forward(x1, x2, params))

    assert out.shape == (N, out_channels, H2, W2)
    err = float(jnp.max(jnp.abs(out - ref)))
    if err > 2e-3:
        raise AssertionError(f"mismatch vs reference: max abs err {err}")
    print("KERNEL_OK")
</pallas_src>

<mosaic_0001>
module attributes {stable_mosaic.version = 11 : i64} {
  func.func @_up_fused_kernel(%arg0: memref<8x49xf32, #tpu.memory_space<vmem>>, %arg1: memref<8x256xf32, #tpu.memory_space<vmem>>, %arg2: memref<49x326xf32, #tpu.memory_space<vmem>>, %arg3: memref<256x326xf32, #tpu.memory_space<vmem>>, %arg4: memref<8x72xf32, #tpu.memory_space<vmem>>, %arg5: memref<8x72xf32, #tpu.memory_space<vmem>>, %arg6: memref<16x72xf32, #tpu.memory_space<vmem>>, %arg7: memref<4x1xf32, #tpu.memory_space<vmem>>, %arg8: memref<4x1xf32, #tpu.memory_space<vmem>>, %arg9: memref<8x1xf32, #tpu.memory_space<vmem>>, %arg10: memref<8x1xf32, #tpu.memory_space<vmem>>, %arg11: memref<1x288xf32, #tpu.memory_space<vmem>>, %arg12: memref<2x8x288xf32, #tpu.memory_space<vmem>>) attributes {dimension_semantics = [], scalar_prefetch = 0 : i64, scratch_operands = 0 : i64, tpu.core_type = #tpu.core_type<tc>} {
    %c0 = arith.constant 0 : index
    %c0_0 = arith.constant 0 : index
    %0 = vector.load %arg11[%c0, %c0_0] : memref<1x288xf32, #tpu.memory_space<vmem>>, vector<1x288xf32>
    %1 = vector.shape_cast %0 : vector<1x288xf32> to vector<1x1x288xf32>
    %c0_1 = arith.constant 0 : index
    %c0_2 = arith.constant 0 : index
    %2 = vector.load %arg0[%c0_1, %c0_2] : memref<8x49xf32, #tpu.memory_space<vmem>>, vector<8x49xf32>
    %c0_3 = arith.constant 0 : index
    %c0_4 = arith.constant 0 : index
    %3 = vector.load %arg2[%c0_3, %c0_4] : memref<49x326xf32, #tpu.memory_space<vmem>>, vector<49x326xf32>
    %cst = arith.constant dense<0.000000e+00> : vector<8x326xf32>
    %4 = tpu.matmul %2, %3, %cst {dimension_numbers = #tpu.dot_dimension_numbers<[1], [0], [0], [1], [0, 0, 1, 1], [], []>} : vector<8x49xf32>, vector<49x326xf32>, vector<8x326xf32> -> vector<8x326xf32>
    %c0_5 = arith.constant 0 : index
    %c0_6 = arith.constant 0 : index
    %5 = vector.load %arg1[%c0_5, %c0_6] : memref<8x256xf32, #tpu.memory_space<vmem>>, vector<8x256xf32>
    %c0_7 = arith.constant 0 : index
    %c0_8 = arith.constant 0 : index
    %6 = vector.load %arg3[%c0_7, %c0_8] : memref<256x326xf32, #tpu.memory_space<vmem>>, vector<256x326xf32>
    %cst_9 = arith.constant dense<0.000000e+00> : vector<8x326xf32>
    %7 = tpu.matmul %5, %6, %cst_9 {dimension_numbers = #tpu.dot_dimension_numbers<[1], [0], [0], [1], [0, 0, 1, 1], [], []>} : vector<8x256xf32>, vector<256x326xf32>, vector<8x326xf32> -> vector<8x326xf32>
    %8 = vector.extract_strided_slice %7 {offsets = [0, 0], sizes = [8, 288], strides = [1, 1]} : vector<8x326xf32> to vector<8x288xf32>
    %9 = vector.extract_strided_slice %7 {offsets = [0, 1], sizes = [8, 288], strides = [1, 1]} : vector<8x326xf32> to vector<8x288xf32>
    %10 = vector.extract_strided_slice %7 {offsets = [0, 2], sizes = [8, 288], strides = [1, 1]} : vector<8x326xf32> to vector<8x288xf32>
    %11 = vector.extract_strided_slice %7 {offsets = [0, 18], sizes = [8, 288], strides = [1, 1]} : vector<8x326xf32> to vector<8x288xf32>
    %12 = vector.extract_strided_slice %7 {offsets = [0, 19], sizes = [8, 288], strides = [1, 1]} : vector<8x326xf32> to vector<8x288xf32>
    %13 = vector.extract_strided_slice %7 {offsets = [0, 20], sizes = [8, 288], strides = [1, 1]} : vector<8x326xf32> to vector<8x288xf32>
    %14 = vector.extract_strided_slice %7 {offsets = [0, 36], sizes = [8, 288], strides = [1, 1]} : vector<8x326xf32> to vector<8x288xf32>
    %15 = vector.extract_strided_slice %7 {offsets = [0, 37], sizes = [8, 288], strides = [1, 1]} : vector<8x326xf32> to vector<8x288xf32>
    %16 = vector.extract_strided_slice %7 {offsets = [0, 38], sizes = [8, 288], strides = [1, 1]} : vector<8x326xf32> to vector<8x288xf32>
    %17 = tpu.concatenate %8, %9, %10, %11, %12, %13, %14, %15, %16 in 0 : vector<8x288xf32>, vector<8x288xf32>, vector<8x288xf32>, vector<8x288xf32>, vector<8x288xf32>, vector<8x288xf32>, vector<8x288xf32>, vector<8x288xf32>, vector<8x288xf32> -> vector<72x288xf32>
    %18 = vector.extract_strided_slice %4 {offsets = [0, 0], sizes = [8, 288], strides = [1, 1]} : vector<8x326xf32> to vector<8x288xf32>
    %19 = vector.extract_strided_slice %4 {offsets = [0, 1], sizes = [8, 288], strides = [1, 1]} : vector<8x326xf32> to vector<8x288xf32>
    %20 = vector.extract_strided_slice %4 {offsets = [0, 2], sizes = [8, 288], strides = [1, 1]} : vector<8x326xf32> to vector<8x288xf32>
    %21 = vector.extract_strided_slice %4 {offsets = [0, 18], sizes = [8, 288], strides = [1, 1]} : vector<8x326xf32> to vector<8x288xf32>
    %22 = vector.extract_strided_slice %4 {offsets = [0, 19], sizes = [8, 288], strides = [1, 1]} : vector<8x326xf32> to vector<8x288xf32>
    %23 = vector.extract_strided_slice %4 {offsets = [0, 20], sizes = [8, 288], strides = [1, 1]} : vector<8x326xf32> to vector<8x288xf32>
    %24 = vector.extract_strided_slice %4 {offsets = [0, 36], sizes = [8, 288], strides = [1, 1]} : vector<8x326xf32> to vector<8x288xf32>
    %25 = vector.extract_strided_slice %4 {offsets = [0, 37], sizes = [8, 288], strides = [1, 1]} : vector<8x326xf32> to vector<8x288xf32>
    %26 = vector.extract_strided_slice %4 {offsets = [0, 38], sizes = [8, 288], strides = [1, 1]} : vector<8x326xf32> to vector<8x288xf32>
    %27 = tpu.concatenate %18, %19, %20, %21, %22, %23, %24, %25, %26 in 0 : vector<8x288xf32>, vector<8x288xf32>, vector<8x288xf32>, vector<8x288xf32>, vector<8x288xf32>, vector<8x288xf32>, vector<8x288xf32>, vector<8x288xf32>, vector<8x288xf32> -> vector<72x288xf32>
    %c0_10 = arith.constant 0 : index
    %c0_11 = arith.constant 0 : index
    %28 = vector.load %arg4[%c0_10, %c0_11] : memref<8x72xf32, #tpu.memory_space<vmem>>, vector<8x72xf32>
    %cst_12 = arith.constant dense<0.000000e+00> : vector<8x288xf32>
    %29 = tpu.matmul %28, %17, %cst_12 {dimension_numbers = #tpu.dot_dimension_numbers<[1], [0], [0], [1], [0, 0, 1, 1], [], []>} : vector<8x72xf32>, vector<72x288xf32>, vector<8x288xf32> -> vector<8x288xf32>
    %c0_13 = arith.constant 0 : index
    %c0_14 = arith.constant 0 : index
    %30 = vector.load %arg5[%c0_13, %c0_14] : memref<8x72xf32, #tpu.memory_space<vmem>>, vector<8x72xf32>
    %cst_15 = arith.constant dense<0.000000e+00> : vector<8x288xf32>
    %31 = tpu.matmul %30, %27, %cst_15 {dimension_numbers = #tpu.dot_dimension_numbers<[1], [0], [0], [1], [0, 0, 1, 1], [], []>} : vector<8x72xf32>, vector<72x288xf32>, vector<8x288xf32> -> vector<8x288xf32>
    %32 = arith.addf %29, %31 : vector<8x288xf32>
    %33 = vector.shape_cast %32 : vector<8x288xf32> to vector<2x4x288xf32>
    %34 = vector.broadcast %1 : vector<1x1x288xf32> to vector<2x4x288xf32>
    %35 = arith.mulf %33, %34 : vector<2x4x288xf32>
    %cst_16 = arith.constant dense<0.000000e+00> : vector<2x4xf32>
    %36 = vector.multi_reduction <add>, %35, %cst_16 [2] : vector<2x4x288xf32> to vector<2x4xf32>
    %37 = vector.shape_cast %36 : vector<2x4xf32> to vector<2x4x1xf32>
    %cst_17 = arith.constant dense<0.000000e+00> : vector<4x1xf32>
    %38 = vector.multi_reduction <add>, %37, %cst_17 [0] : vector<2x4x1xf32> to vector<4x1xf32>
    %39 = vector.shape_cast %38 : vector<4x1xf32> to vector<1x4x1xf32>
    %cst_18 = arith.constant 5.120000e+02 : f32
    %40 = vector.broadcast %cst_18 : f32 to vector<1x4x1xf32>
    %41 = arith.divf %39, %40 : vector<1x4x1xf32>
    %42 = vector.broadcast %41 : vector<1x4x1xf32> to vector<2x4x288xf32>
    %43 = arith.subf %33, %42 : vector<2x4x288xf32>
    %44 = arith.mulf %43, %43 : vector<2x4x288xf32>
    %45 = vector.broadcast %1 : vector<1x1x288xf32> to vector<2x4x288xf32>
    %46 = arith.mulf %44, %45 : vector<2x4x288xf32>
    %cst_19 = arith.constant dense<0.000000e+00> : vector<2x4xf32>
    %47 = vector.multi_reduction <add>, %46, %cst_19 [2] : vector<2x4x288xf32> to vector<2x4xf32>
    %48 = vector.shape_cast %47 : vector<2x4xf32> to vector<2x4x1xf32>
    %cst_20 = arith.constant dense<0.000000e+00> : vector<4x1xf32>
    %49 = vector.multi_reduction <add>, %48, %cst_20 [0] : vector<2x4x1xf32> to vector<4x1xf32>
    %50 = vector.shape_cast %49 : vector<4x1xf32> to vector<1x4x1xf32>
    %cst_21 = arith.constant 5.120000e+02 : f32
    %51 = vector.broadcast %cst_21 : f32 to vector<1x4x1xf32>
    %52 = arith.divf %50, %51 : vector<1x4x1xf32>
    %c0_22 = arith.constant 0 : index
    %c0_23 = arith.constant 0 : index
    %53 = vector.load %arg7[%c0_22, %c0_23] : memref<4x1xf32, #tpu.memory_space<vmem>>, vector<4x1xf32>
    %54 = vector.shape_cast %53 : vector<4x1xf32> to vector<1x4x1xf32>
    %c0_24 = arith.constant 0 : index
    %c0_25 = arith.constant 0 : index
    %55 = vector.load %arg8[%c0_24, %c0_25] : memref<4x1xf32, #tpu.memory_space<vmem>>, vector<4x1xf32>
    %56 = vector.shape_cast %55 : vector<4x1xf32> to vector<1x4x1xf32>
    %cst_26 = arith.constant 9.99999974E-6 : f32
    %57 = vector.broadcast %cst_26 : f32 to vector<1x4x1xf32>
    %58 = arith.addf %52, %57 : vector<1x4x1xf32>
    %59 = math.rsqrt %58 : vector<1x4x1xf32>
    %60 = arith.mulf %54, %59 : vector<1x4x1xf32>
    %61 = vector.broadcast %60 : vector<1x4x1xf32> to vector<2x4x288xf32>
    %62 = arith.mulf %43, %61 : vector<2x4x288xf32>
    %63 = vector.broadcast %56 : vector<1x4x1xf32> to vector<2x4x288xf32>
    %64 = arith.addf %62, %63 : vector<2x4x288xf32>
    %cst_27 = arith.constant 0.000000e+00 : f32
    %65 = vector.broadcast %cst_27 : f32 to vector<2x4x288xf32>
    %66 = arith.maximumf %64, %65 : vector<2x4x288xf32>
    %67 = vector.broadcast %1 : vector<1x1x288xf32> to vector<2x4x288xf32>
    %68 = arith.mulf %66, %67 : vector<2x4x288xf32>
    %cst_28 = arith.constant 0.000000e+00 : f32
    %69 = vector.broadcast %cst_28 : f32 to vector<2x4x19xf32>
    %cst_29 = arith.constant 0.000000e+00 : f32
    %70 = vector.broadcast %cst_29 : f32 to vector<2x4x19xf32>
    %71 = tpu.concatenate %69, %68, %70 in 2 : vector<2x4x19xf32>, vector<2x4x288xf32>, vector<2x4x19xf32> -> vector<2x4x326xf32>
    %72 = vector.shape_cast %71 : vector<2x4x326xf32> to vector<8x326xf32>
    %73 = vector.extract_strided_slice %72 {offsets = [0, 0], sizes = [8, 288], strides = [1, 1]} : vector<8x326xf32> to vector<8x288xf32>
    %74 = vector.extract_strided_slice %72 {offsets = [0, 1], sizes = [8, 288], strides = [1, 1]} : vector<8x326xf32> to vector<8x288xf32>
    %75 = vector.extract_strided_slice %72 {offsets = [0, 2], sizes = [8, 288], strides = [1, 1]} : vector<8x326xf32> to vector<8x288xf32>
    %76 = vector.extract_strided_slice %72 {offsets = [0, 18], sizes = [8, 288], strides = [1, 1]} : vector<8x326xf32> to vector<8x288xf32>
    %77 = vector.extract_strided_slice %72 {offsets = [0, 19], sizes = [8, 288], strides = [1, 1]} : vector<8x326xf32> to vector<8x288xf32>
    %78 = vector.extract_strided_slice %72 {offsets = [0, 20], sizes = [8, 288], strides = [1, 1]} : vector<8x326xf32> to vector<8x288xf32>
    %79 = vector.extract_strided_slice %72 {offsets = [0, 36], sizes = [8, 288], strides = [1, 1]} : vector<8x326xf32> to vector<8x288xf32>
    %80 = vector.extract_strided_slice %72 {offsets = [0, 37], sizes = [8, 288], strides = [1, 1]} : vector<8x326xf32> to vector<8x288xf32>
    %81 = vector.extract_strided_slice %72 {offsets = [0, 38], sizes = [8, 288], strides = [1, 1]} : vector<8x326xf32> to vector<8x288xf32>
    %82 = tpu.concatenate %73, %74, %75, %76, %77, %78, %79, %80, %81 in 0 : vector<8x288xf32>, vector<8x288xf32>, vector<8x288xf32>, vector<8x288xf32>, vector<8x288xf32>, vector<8x288xf32>, vector<8x288xf32>, vector<8x288xf32>, vector<8x288xf32> -> vector<72x288xf32>
    %c0_30 = arith.constant 0 : index
    %c0_31 = arith.constant 0 : index
    %83 = vector.load %arg6[%c0_30, %c0_31] : memref<16x72xf32, #tpu.memory_space<vmem>>, vector<16x72xf32>
    %cst_32 = arith.constant dense<0.000000e+00> : vector<16x288xf32>
    %84 = tpu.matmul %83, %82, %cst_32 {dimension_numbers = #tpu.dot_dimension_numbers<[1], [0], [0], [1], [0, 0, 1, 1], [], []>} : vector<16x72xf32>, vector<72x288xf32>, vector<16x288xf32> -> vector<16x288xf32>
    %85 = vector.shape_cast %84 : vector<16x288xf32> to vector<2x8x288xf32>
    %86 = vector.broadcast %1 : vector<1x1x288xf32> to vector<2x8x288xf32>
    %87 = arith.mulf %85, %86 : vector<2x8x288xf32>
    %cst_33 = arith.constant dense<0.000000e+00> : vector<2x8xf32>
    %88 = vector.multi_reduction <add>, %87, %cst_33 [2] : vector<2x8x288xf32> to vector<2x8xf32>
    %89 = vector.shape_cast %88 : vector<2x8xf32> to vector<2x8x1xf32>
    %cst_34 = arith.constant dense<0.000000e+00> : vector<8x1xf32>
    %90 = vector.multi_reduction <add>, %89, %cst_34 [0] : vector<2x8x1xf32> to vector<8x1xf32>
    %91 = vector.shape_cast %90 : vector<8x1xf32> to vector<1x8x1xf32>
    %cst_35 = arith.constant 5.120000e+02 : f32
    %92 = vector.broadcast %cst_35 : f32 to vector<1x8x1xf32>
    %93 = arith.divf %91, %92 : vector<1x8x1xf32>
    %94 = vector.broadcast %93 : vector<1x8x1xf32> to vector<2x8x288xf32>
    %95 = arith.subf %85, %94 : vector<2x8x288xf32>
    %96 = arith.mulf %95, %95 : vector<2x8x288xf32>
    %97 = vector.broadcast %1 : vector<1x1x288xf32> to vector<2x8x288xf32>
    %98 = arith.mulf %96, %97 : vector<2x8x288xf32>
    %cst_36 = arith.constant dense<0.000000e+00> : vector<2x8xf32>
    %99 = vector.multi_reduction <add>, %98, %cst_36 [2] : vector<2x8x288xf32> to vector<2x8xf32>
    %100 = vector.shape_cast %99 : vector<2x8xf32> to vector<2x8x1xf32>
    %cst_37 = arith.constant dense<0.000000e+00> : vector<8x1xf32>
    %101 = vector.multi_reduction <add>, %100, %cst_37 [0] : vector<2x8x1xf32> to vector<8x1xf32>
    %102 = vector.shape_cast %101 : vector<8x1xf32> to vector<1x8x1xf32>
    %cst_38 = arith.constant 5.120000e+02 : f32
    %103 = vector.broadcast %cst_38 : f32 to vector<1x8x1xf32>
    %104 = arith.divf %102, %103 : vector<1x8x1xf32>
    %c0_39 = arith.constant 0 : index
    %c0_40 = arith.constant 0 : index
    %105 = vector.load %arg9[%c0_39, %c0_40] : memref<8x1xf32, #tpu.memory_space<vmem>>, vector<8x1xf32>
    %106 = vector.shape_cast %105 : vector<8x1xf32> to vector<1x8x1xf32>
    %c0_41 = arith.constant 0 : index
    %c0_42 = arith.constant 0 : index
    %107 = vector.load %arg10[%c0_41, %c0_42] : memref<8x1xf32, #tpu.memory_space<vmem>>, vector<8x1xf32>
    %108 = vector.shape_cast %107 : vector<8x1xf32> to vector<1x8x1xf32>
    %cst_43 = arith.constant 9.99999974E-6 : f32
    %109 = vector.broadcast %cst_43 : f32 to vector<1x8x1xf32>
    %110 = arith.addf %104, %109 : vector<1x8x1xf32>
    %111 = math.rsqrt %110 : vector<1x8x1xf32>
    %112 = arith.mulf %106, %111 : vector<1x8x1xf32>
    %113 = vector.broadcast %112 : vector<1x8x1xf32> to vector<2x8x288xf32>
    %114 = arith.mulf %95, %113 : vector<2x8x288xf32>
    %115 = vector.broadcast %108 : vector<1x8x1xf32> to vector<2x8x288xf32>
    %116 = arith.addf %114, %115 : vector<2x8x288xf32>
    %cst_44 = arith.constant 0.000000e+00 : f32
    %117 = vector.broadcast %cst_44 : f32 to vector<2x8x288xf32>
    %118 = arith.maximumf %116, %117 : vector<2x8x288xf32>
    %c0_45 = arith.constant 0 : index
    %c0_46 = arith.constant 0 : index
    %c0_47 = arith.constant 0 : index
    %119 = vector.load %arg12[%c0_45, %c0_46, %c0_47] : memref<2x8x288xf32, #tpu.memory_space<vmem>>, vector<2x8x288xf32>
    tpu.vector_store %arg12[%c0_45, %c0_46, %c0_47], %118 {strides = array<i32>} : memref<2x8x288xf32, #tpu.memory_space<vmem>>, vector<2x8x288xf32>,
    return
  }
}

</mosaic_0001>

<bundles_post_ra>
// kernel: up_forward.1
= control target key start
LH: loop header
LB: loop body
LE: loop exit
PB: predicated region body
PF: predicated region fallthrough
CT: control target
= control target key end

     0   :  { %v1974_v3 = vmov 0.0|0.0   ;;  %v1975_v4 = vmov 0.0   ;;  %vm1976_vm0 = vmmov 0   ;;  %vm68_vm1 = vcmask 1040384   ;;  %s1977_s25 = smov 110   ;;  %s1978_s26 = smov 127   ;;  %s2736_s2 = inlined_call_operand.vmem [shape: f32[49,326], index: 2, kind: input, shape index: {}]   ;;  %s2737_s3 = inlined_call_operand.vmem [shape: f32[256,326], index: 3, kind: input, shape index: {}]   ;;  %s2738_s0 = inlined_call_operand.vmem [shape: f32[8,49], index: 0, kind: input, shape index: {}]   ;;  %s2739_s1 = inlined_call_operand.vmem [shape: f32[8,256], index: 1, kind: input, shape index: {}]   ;;  %s2740_s5 = inlined_call_operand.vmem [shape: f32[8,72], index: 5, kind: input, shape index: {}]   ;;  %s2741_s4 = inlined_call_operand.vmem [shape: f32[8,72], index: 4, kind: input, shape index: {}]   ;;  %s2742_s11 = inlined_call_operand.vmem [shape: f32[1,288], index: 11, kind: input, shape index: {}]   ;;  %s2743_s8 = inlined_call_operand.vmem [shape: f32[4,1], index: 8, kind: input, shape index: {}]   ;;  %s2744_s7 = inlined_call_operand.vmem [shape: f32[4,1], index: 7, kind: input, shape index: {}]   ;;  %s2745_s6 = inlined_call_operand.vmem [shape: f32[16,72], index: 6, kind: input, shape index: {}]   ;;  %s2746_s10 = inlined_call_operand.vmem [shape: f32[8,1], index: 10, kind: input, shape index: {}]   ;;  %s2747_s9 = inlined_call_operand.vmem [shape: f32[8,1], index: 9, kind: input, shape index: {}]   ;;  %s2748_s12 = inlined_call_operand.vmem [shape: f32[2,8,288], index: 12, kind: output, shape index: {}]  }
   0x1   :  { %v44_v0 = vld [vmem:[%s2736_s2 + $0x8] sm:$0xff]  ;;  %v47_v1 = vld [vmem:[%s2736_s2 + $0x20] sm:$0xff]  ;;  %1652 = vmatprep.subr.bf16.mxu1 %v1974_v3  ;;  %142 = vmatprep.mubr.f32.mxu0 %v1975_v4  ;;  %v46_v6 = vld [vmem:[%s2736_s2 + $0x18] sm:$0xff]  ;;  %vm64_vm2 = vcmask 400384   ;;  %s1981_s27 = smov 109   ;;  %s1983_s28 = smov 91  }
   0x2   :  { %v43_v2 = vld [vmem:[%s2736_s2] sm:$0xff]  ;;  %v1640_v5 = vpack.c.bf16 %v47_v1, %v44_v0  ;;  %v45_v7 = vld [vmem:[%s2736_s2 + $0x10] sm:$0xff]  ;;  %v48_v8 = vld [vmem:[%s2736_s2 + $0x28] sm:$0xff]  ;;  %1574 = vmatprep.mubr.msk.f32.mxu1 %vm1976_vm0, %v1975_v4  ;;  %vm491_vm3 = vcmask 900096   ;;  %vm467_vm4 = vcmask 1039360   ;;  %vm479_vm5 = vcmask 1031168  }
   0x3   :  { %v1642_v9 = vpack.c.bf16 %v46_v6, %v43_v2  ;;  %v1653_v10 = vpack.c.bf16 %v48_v8, %v45_v7  ;;  %v50_v11 = vld [vmem:[%s2736_s2 + $0x38] sm:$0xff]  ;;  %v53_v12 = vld [vmem:[%s2736_s2 + $0x50] sm:$0xff]  ;;  %v52_v15 = vld [vmem:[%s2736_s2 + $0x48] sm:$0xff]  ;;  %vm515_vm6 = vcmask 883712   ;;  %vm503_vm7 = vcmask 891904  }
   0x4   :  { %v49_v13 = vld [vmem:[%s2736_s2 + $0x30] sm:$0xff]  ;;  %1641 = vmatprep.subr.bf16.mxu0 %v1640_v5  ;;  %v1644_v14 = vpack.c.bf16 %v53_v12, %v50_v11  ;;  %v51_v16 = vld [vmem:[%s2736_s2 + $0x40] sm:$0xff]  ;;  %v54_v17 = vld [vmem:[%s2736_s2 + $0x58] sm:$0xff]  ;;  %vm539_vm8 = vcmask 744448   ;;  %vm527_vm9 = vcmask 752640   ;;  %vm551_vm10 = vcmask 736256  }
   0x5   :  { %1643 = vmatpush1.bf16.msra.mxu0 %v1642_v9  ;;  %1654 = vmatpush3.bf16.msra.mxu1 %v1653_v10  ;;  %v1646_v18 = vpack.c.bf16 %v52_v15, %v49_v13  ;;  %v1656_v19 = vpack.c.bf16 %v54_v17, %v51_v16  ;;  %v56_v20 = vld [vmem:[%s2736_s2 + $0x68] sm:$0xff]  ;;  %v59_v21 = vld [vmem:[%s2736_s2 + $0x80] sm:$0xff]  ;;  %v58_v24 = vld [vmem:[%s2736_s2 + $0x78] sm:$0xff]  ;;  %vm650_vm11 = vcmask 588800   ;;  %vm974_vm12 = vcmask 1043456  }
   0x6   :  { %v55_v22 = vld [vmem:[%s2736_s2 + $0x60] sm:$0xff]  ;;  %1645 = vmatprep.subr.bf16.mxu0 %v1644_v14  ;;  %1655 = vmatprep.subr.bf16.mxu1 %v1974_v3  ;;  %v1648_v23 = vpack.c.bf16 %v59_v21, %v56_v20  ;;  %v57_v25 = vld [vmem:[%s2736_s2 + $0x70] sm:$0xff]  ;;  %v60_v26 = vld [vmem:[%s2736_s2 + $0x88] sm:$0xff]  ;;  %vm978_vm13 = vcmask 257024   ;;  %vm1103_vm14 = vcmask 154624   ;;  %vm1114_vm15 = vcmask 416768  }
   0x7   :  { %v1650_v27 = vpack.c.bf16 %v58_v24, %v55_v22  ;;  %v1659_v28 = vpack.c.bf16 %v60_v26, %v57_v25  ;;  %v62_v29 = vld [vmem:[%s2736_s2 + $0x98] sm:$0x1]  ;;  %v222_v30 = vld [vmem:[%s2737_s3 + $0x8] sm:$0xff]  ;;  %v225_v31 = vld [vmem:[%s2737_s3 + $0x20] sm:$0xff] }
   0x8   :  { %v221_v32 = vld [vmem:[%s2737_s3] sm:$0xff]  ;;  %v224_v33 = vld [vmem:[%s2737_s3 + $0x18] sm:$0xff]  ;;  %v231_v35 = vld [vmem:[%s2737_s3 + $0x50] sm:$0xff]  ;;  %v1661_v38 = vpack.c.bf16 %v225_v31, %v222_v30 }
   0x9   :  { %1647 = vmatpush1.bf16.msra.mxu0 %v1646_v18  ;;  %1657 = vmatpush3.bf16.msra.mxu1 %v1656_v19  ;;  %v228_v34 = vld [vmem:[%s2737_s3 + $0x38] sm:$0xff]  ;;  %v61_v36 = vld [vmem:[%s2736_s2 + $0x90] sm:$0x1]  ;;  %v63_v37 = vld [vmem:[%s2736_s2 + $0xa0] sm:$0x1]  ;;  %v1663_v40 = vpack.c.bf16 %v224_v33, %v221_v32  ;;  %s1980_s2 = smov 126  }
   0xa   :  { %1649 = vmatprep.subr.bf16.mxu0 %v1648_v23  ;;  %1658 = vmatprep.subr.bf16.mxu1 %v1974_v3  ;;  %v42_v39 = vld [vmem:[%s2738_s0] sm:$0xff]  ;;  %v1665_v41 = vpack.c.bf16 %v231_v35, %v228_v34  ;;  %v227_v42 = vld [vmem:[%s2737_s3 + $0x30] sm:$0xff]  ;;  %v230_v43 = vld [vmem:[%s2737_s3 + $0x48] sm:$0xff]  ;;  %s1982_s0 = smov 92  }
   0xb   :  { %v234_v44 = vld [vmem:[%s2737_s3 + $0x68] sm:$0xff]  ;;  %v237_v45 = vld [vmem:[%s2737_s3 + $0x80] sm:$0xff]  ;;  %v1667_v46 = vpack.c.bf16 %v230_v43, %v227_v42  ;;  %v271_v47 = vld [vmem:[%s2737_s3 + $0x190] sm:$0xff] }
   0xc   :  { %v274_v48 = vld [vmem:[%s2737_s3 + $0x1a8] sm:$0xff]  ;;  %v223_v49 = vld [vmem:[%s2737_s3 + $0x10] sm:$0xff]  ;;  %v1669_v50 = vpack.c.bf16 %v237_v45, %v234_v44  ;;  %v233_v51 = vld [vmem:[%s2737_s3 + $0x60] sm:$0xff] }
   0xd   :  { %1651 = vmatpush1.bf16.msra.mxu0 %v1650_v27  ;;  %1660 = vmatpush3.bf16.msra.mxu1 %v1659_v28  ;;  %v236_v52 = vld [vmem:[%s2737_s3 + $0x78] sm:$0xff]  ;;  %v1725_v53 = vpack.c.bf16 %v274_v48, %v271_v47  ;;  %v226_v54 = vld [vmem:[%s2737_s3 + $0x28] sm:$0xff]  ;;  %v243_v56 = vld [vmem:[%s2737_s3 + $0xb0] sm:$0xff] }
   0xe   :  { %1471 = vmatprep.subr.msk.mxu0 %vm68_vm1, %v62_v29  ;;  %1572 = vmatprep.subr.mxu1 %v1975_v4  ;;  %v240_v55 = vld [vmem:[%s2737_s3 + $0x98] sm:$0xff]  ;;  %v1727_v57 = vpack.c.bf16 %v226_v54, %v223_v49  ;;  %v277_v58 = vld [vmem:[%s2737_s3 + $0x1c0] sm:$0xff]  ;;  %v1671_v62 = vpack.c.bf16 %v236_v52, %v233_v51  ;;  %v239_v63 = vld [vmem:[%s2737_s3 + $0x90] sm:$0xff] }
   0xf   :  { %v280_v59 = vld [vmem:[%s2737_s3 + $0x1d8] sm:$0xff]  ;;  %v229_v60 = vld [vmem:[%s2737_s3 + $0x40] sm:$0xff]  ;;  %v242_v0 = vld [vmem:[%s2737_s3 + $0xa8] sm:$0xff]  ;;  %v1673_v5 = vpack.c.bf16 %v243_v56, %v240_v55 }
  0x10   :  { %v232_v61 = vld [vmem:[%s2737_s3 + $0x58] sm:$0xff]  ;;  %v1729_v1 = vpack.c.bf16 %v280_v59, %v277_v58  ;;  %v246_v6 = vld [vmem:[%s2737_s3 + $0xc8] sm:$0xff]  ;;  %v283_v7 = vld [vmem:[%s2737_s3 + $0x1f0] sm:$0xff]  ;;  %v1675_v13 = vpack.c.bf16 %v242_v0, %v239_v63 }
  0x11   :  { %1472 = vmatpush1.msk.msra.mxu0 %vm68_vm1, %v61_v36  ;;  %1573 = vmatpush3.msk.msra.mxu1 %vm68_vm1, %v63_v37  ;;  %v1731_v2 = vpack.c.bf16 %v232_v61, %v229_v60  ;;  %v286_v8 = vld [vmem:[%s2737_s3 + $0x208] sm:$0xff]  ;;  %v249_v9 = vld [vmem:[%s2737_s3 + $0xe0] sm:$0xff]  ;;  %v235_v11 = vld [vmem:[%s2737_s3 + $0x70] sm:$0xff] }
  0x12   :  { %1473 = vmatmul.mubr.msk.f32.vlgmr.msra.gmra.mrb[0].mxu0 %vm64_vm2, %v42_v39  ;;  %1662 = vmatprep.subr.bf16.mxu0 %v1661_v38  ;;  %v1733_v10 = vpack.c.bf16 %v286_v8, %v283_v7  ;;  %v238_v12 = vld [vmem:[%s2737_s3 + $0x88] sm:$0xff]  ;;  %v245_v14 = vld [vmem:[%s2737_s3 + $0xc0] sm:$0xff]  ;;  %v292_v17 = vld [vmem:[%s2737_s3 + $0x238] sm:$0xff]  ;;  %v1677_v18 = vpack.c.bf16 %v249_v9, %v246_v6 }
  0x13   :  { %1575 = vmatmul.mubr.msk.f32.vlgmr.msra.gmra.mrb[0].mxu1 %vm64_vm2, %v42_v39  ;;  %1664 = vmatpush1.bf16.msra.mxu0 %v1663_v40  ;;  %v1735_v15 = vpack.c.bf16 %v238_v12, %v235_v11  ;;  %v289_v16 = vld [vmem:[%s2737_s3 + $0x220] sm:$0xff]  ;;  %v248_v19 = vld [vmem:[%s2737_s3 + $0xd8] sm:$0xff]  ;;  %v255_v24 = vld [vmem:[%s2737_s3 + $0x110] sm:$0xff] }
  0x14   :  { %1666 = vmatprep.subr.bf16.mxu0 %v1665_v41  ;;  %1726 = vmatprep.subr.bf16.mxu1 %v1725_v53  ;;  %v1737_v20 = vpack.c.bf16 %v292_v17, %v289_v16  ;;  %v241_v21 = vld [vmem:[%s2737_s3 + $0xa0] sm:$0xff]  ;;  %v244_v22 = vld [vmem:[%s2737_s3 + $0xb8] sm:$0xff]  ;;  %v295_v25 = vld [vmem:[%s2737_s3 + $0x250] sm:$0xff]  ;;  %v1679_v27 = vpack.c.bf16 %v248_v19, %v245_v14 }
  0x15   :  { %1728 = vmatpush3.bf16.msra.mxu1 %v1727_v57  ;;  %v252_v23 = vld [vmem:[%s2737_s3 + $0xf8] sm:$0xff]  ;;  %v298_v26 = vld [vmem:[%s2737_s3 + $0x268] sm:$0xff]  ;;  %v251_v28 = vld [vmem:[%s2737_s3 + $0xf0] sm:$0xff]  ;;  %v1739_v30 = vpack.c.bf16 %v244_v22, %v241_v21 }
  0x16   :  { %1730 = vmatprep.subr.bf16.mxu1 %v1729_v1  ;;  %v254_v29 = vld [vmem:[%s2737_s3 + $0x108] sm:$0xff]  ;;  %v1681_v31 = vpack.c.bf16 %v255_v24, %v252_v23  ;;  %v1741_v33 = vpack.c.bf16 %v298_v26, %v295_v25  ;;  %v247_v34 = vld [vmem:[%s2737_s3 + $0xd0] sm:$0xff]  ;;  %v261_v36 = vld [vmem:[%s2737_s3 + $0x140] sm:$0xff] }
  0x17   :  { %1668 = vmatpush1.bf16.msra.mxu0 %v1667_v46  ;;  %v258_v32 = vld [vmem:[%s2737_s3 + $0x128] sm:$0xff]  ;;  %v301_v37 = vld [vmem:[%s2737_s3 + $0x280] sm:$0xff]  ;;  %v304_v38 = vld [vmem:[%s2737_s3 + $0x298] sm:$0xff]  ;;  %v1683_v39 = vpack.c.bf16 %v254_v29, %v251_v28 }
  0x18   :  { %1670 = vmatprep.subr.bf16.mxu0 %v1669_v50  ;;  %v250_v35 = vld [vmem:[%s2737_s3 + $0xe8] sm:$0xff]  ;;  %v257_v40 = vld [vmem:[%s2737_s3 + $0x120] sm:$0xff]  ;;  %v260_v41 = vld [vmem:[%s2737_s3 + $0x138] sm:$0xff]  ;;  %v1685_v43 = vpack.c.bf16 %v261_v36, %v258_v32  ;;  %v1745_v45 = vpack.c.bf16 %v304_v38, %v301_v37 }
  0x19   :  { %1732 = vmatpush3.bf16.msra.mxu1 %v1731_v2  ;;  %v1743_v42 = vpack.c.bf16 %v250_v35, %v247_v34  ;;  %v264_v44 = vld [vmem:[%s2737_s3 + $0x158] sm:$0xff]  ;;  %v253_v46 = vld [vmem:[%s2737_s3 + $0x100] sm:$0xff]  ;;  %v267_v48 = vld [vmem:[%s2737_s3 + $0x170] sm:$0xff]  ;;  %v1687_v51 = vpack.c.bf16 %v260_v41, %v257_v40 }
  0x1a   :  { %1734 = vmatprep.subr.bf16.mxu1 %v1733_v10  ;;  %v256_v47 = vld [vmem:[%s2737_s3 + $0x118] sm:$0xff]  ;;  %v307_v49 = vld [vmem:[%s2737_s3 + $0x2b0] sm:$0xff]  ;;  %v310_v50 = vld [vmem:[%s2737_s3 + $0x2c8] sm:$0xff]  ;;  %v1689_v56 = vpack.c.bf16 %v267_v48, %v264_v44 }
  0x1b   :  { %1672 = vmatpush1.bf16.msra.mxu0 %v1671_v62  ;;  %v263_v52 = vld [vmem:[%s2737_s3 + $0x150] sm:$0xff]  ;;  %v266_v53 = vld [vmem:[%s2737_s3 + $0x168] sm:$0xff]  ;;  %v1747_v55 = vpack.c.bf16 %v256_v47, %v253_v46  ;;  %v1749_v57 = vpack.c.bf16 %v310_v50, %v307_v49  ;;  %v273_v61 = vld [vmem:[%s2737_s3 + $0x1a0] sm:$0xff] }
  0x1c   :  { %1674 = vmatprep.subr.bf16.mxu0 %v1673_v5  ;;  %v270_v54 = vld [vmem:[%s2737_s3 + $0x188] sm:$0xff]  ;;  %v259_v58 = vld [vmem:[%s2737_s3 + $0x130] sm:$0xff]  ;;  %v313_v62 = vld [vmem:[%s2737_s3 + $0x2e0] sm:$0xff]  ;;  %v1691_v0 = vpack.c.bf16 %v266_v53, %v263_v52 }
  0x1d   :  { %1736 = vmatpush3.bf16.msra.mxu1 %v1735_v15  ;;  %v262_v59 = vld [vmem:[%s2737_s3 + $0x148] sm:$0xff]  ;;  %v316_v63 = vld [vmem:[%s2737_s3 + $0x2f8] sm:$0xff]  ;;  %v269_v1 = vld [vmem:[%s2737_s3 + $0x180] sm:$0xff]  ;;  %v1693_v5 = vpack.c.bf16 %v273_v61, %v270_v54 }
  0x1e   :  { %1738 = vmatprep.subr.bf16.mxu1 %v1737_v20  ;;  %v220_v60 = vld [vmem:[%s2739_s1 + $0x8] sm:$0xff]  ;;  %v1751_v2 = vpack.c.bf16 %v262_v59, %v259_v58  ;;  %v272_v6 = vld [vmem:[%s2737_s3 + $0x198] sm:$0xff]  ;;  %v1753_v7 = vpack.c.bf16 %v316_v63, %v313_v62  ;;  %v265_v8 = vld [vmem:[%s2737_s3 + $0x160] sm:$0xff] }
  0x1f   :  { %1676 = vmatpush1.bf16.msra.mxu0 %v1675_v13  ;;  %452 = vmatprep.mubr.f32.mxu1 %v220_v60  ;;  %v268_v9 = vld [vmem:[%s2737_s3 + $0x178] sm:$0xff]  ;;  %v279_v11 = vld [vmem:[%s2737_s3 + $0x1d0] sm:$0xff]  ;;  %v1695_v12 = vpack.c.bf16 %v272_v6, %v269_v1  ;;  %v278_v16 = vld [vmem:[%s2737_s3 + $0x1c8] sm:$0xff] }
  0x20   :  { %1678 = vmatprep.subr.bf16.mxu0 %v1677_v18  ;;  %381 = vmatprep.mubr.f32.mxu0 %v220_v60  ;;  %v276_v10 = vld [vmem:[%s2737_s3 + $0x1b8] sm:$0xff]  ;;  %v1755_v13 = vpack.c.bf16 %v268_v9, %v265_v8  ;;  %v275_v15 = vld [vmem:[%s2737_s3 + $0x1b0] sm:$0xff]  ;;  %v282_v17 = vld [vmem:[%s2737_s3 + $0x1e8] sm:$0xff] }
  0x21   :  { %1740 = vmatpush3.bf16.msra.mxu1 %v1739_v30  ;;  %v1697_v14 = vpack.c.bf16 %v279_v11, %v276_v10  ;;  %v285_v18 = vld [vmem:[%s2737_s3 + $0x200] sm:$0xff]  ;;  %v1699_v19 = vpack.c.bf16 %v278_v16, %v275_v15  ;;  %v284_v23 = vld [vmem:[%s2737_s3 + $0x1f8] sm:$0xff]  ;;  %v291_v25 = vld [vmem:[%s2737_s3 + $0x230] sm:$0xff] }
  0x22   :  { %1742 = vmatprep.subr.bf16.mxu1 %v1741_v33  ;;  %v219_v20 = vld [vmem:[%s2739_s1] sm:$0xff]  ;;  %v1701_v21 = vpack.c.bf16 %v285_v18, %v282_v17  ;;  %v288_v24 = vld [vmem:[%s2737_s3 + $0x218] sm:$0xff]  ;;  %v287_v28 = vld [vmem:[%s2737_s3 + $0x210] sm:$0xff]  ;;  %s1984_s1 = smov 90  }
  0x23   :  { %1680 = vmatpush1.bf16.msra.mxu0 %v1679_v27  ;;  %v281_v22 = vld [vmem:[%s2737_s3 + $0x1e0] sm:$0xff]  ;;  %v1705_v27 = vpack.c.bf16 %v291_v25, %v288_v24  ;;  %v290_v29 = vld [vmem:[%s2737_s3 + $0x228] sm:$0xff]  ;;  %v296_v35 = vld [vmem:[%s2737_s3 + $0x258] sm:$0xff] }
  0x24   :  { %1682 = vmatprep.subr.bf16.mxu0 %v1681_v31  ;;  %v1703_v26 = vpack.c.bf16 %v284_v23, %v281_v22  ;;  %v294_v30 = vld [vmem:[%s2737_s3 + $0x248] sm:$0xff]  ;;  %v297_v31 = vld [vmem:[%s2737_s3 + $0x260] sm:$0xff]  ;;  %v1707_v32 = vpack.c.bf16 %v290_v29, %v287_v28  ;;  %v300_v36 = vld [vmem:[%s2737_s3 + $0x278] sm:$0xff] }
  0x25   :  { %1744 = vmatpush3.bf16.msra.mxu1 %v1743_v42  ;;  %v1709_v33 = vpack.c.bf16 %v297_v31, %v294_v30  ;;  %v293_v34 = vld [vmem:[%s2737_s3 + $0x240] sm:$0xff]  ;;  %v303_v37 = vld [vmem:[%s2737_s3 + $0x290] sm:$0xff]  ;;  %v302_v41 = vld [vmem:[%s2737_s3 + $0x288] sm:$0xff] }
  0x26   :  { %1746 = vmatprep.subr.bf16.mxu1 %v1745_v45  ;;  %v1711_v38 = vpack.c.bf16 %v296_v35, %v293_v34  ;;  %v299_v40 = vld [vmem:[%s2737_s3 + $0x270] sm:$0xff]  ;;  %v306_v42 = vld [vmem:[%s2737_s3 + $0x2a8] sm:$0xff]  ;;  %v305_v46 = vld [vmem:[%s2737_s3 + $0x2a0] sm:$0xff] }
  0x27   :  { %1684 = vmatpush1.bf16.msra.mxu0 %v1683_v39  ;;  %v1713_v39 = vpack.c.bf16 %v303_v37, %v300_v36  ;;  %v1715_v44 = vpack.c.bf16 %v302_v41, %v299_v40  ;;  %v308_v47 = vld [vmem:[%s2737_s3 + $0x2b8] sm:$0xff]  ;;  %v315_v49 = vld [vmem:[%s2737_s3 + $0x2f0] sm:$0xff]  ;;  %v314_v53 = vld [vmem:[%s2737_s3 + $0x2e8] sm:$0xff] }
  0x28   :  { %1686 = vmatprep.subr.bf16.mxu0 %v1685_v43  ;;  %v309_v43 = vld [vmem:[%s2737_s3 + $0x2c0] sm:$0xff]  ;;  %v312_v48 = vld [vmem:[%s2737_s3 + $0x2d8] sm:$0xff]  ;;  %v1719_v50 = vpack.c.bf16 %v308_v47, %v305_v46  ;;  %v311_v52 = vld [vmem:[%s2737_s3 + $0x2d0] sm:$0xff]  ;;  %s1979_s3 = smov 108  }
  0x29   :  { %1748 = vmatpush3.bf16.msra.mxu1 %v1747_v55  ;;  %v1717_v45 = vpack.c.bf16 %v309_v43, %v306_v42  ;;  %v1723_v54 = vpack.c.bf16 %v314_v53, %v311_v52 }
  0x2a   :  { %1750 = vmatprep.subr.bf16.mxu1 %v1749_v57 }
  0x2b   :  { %1688 = vmatpush1.bf16.msra.mxu0 %v1687_v51  ;;  %v1721_v51 = vpack.c.bf16 %v315_v49, %v312_v48 }
  0x2c   :  { %1690 = vmatprep.subr.bf16.mxu0 %v1689_v56 }
  0x2d   :  { %1752 = vmatpush3.bf16.msra.mxu1 %v1751_v2 }
  0x2e   :  { %1754 = vmatprep.subr.bf16.mxu1 %v1753_v7 }
  0x2f   :  { %1692 = vmatpush1.bf16.msra.mxu0 %v1691_v0 }
  0x30   :  { %1694 = vmatprep.subr.bf16.mxu0 %v1693_v5 }
  0x31   :  { %1756 = vmatpush3.bf16.msra.mxu1 %v1755_v13 }
  0x33   :  { %1696 = vmatpush1.bf16.msra.mxu0 %v1695_v12 }
  0x34   :  { %1698 = vmatprep.subr.bf16.mxu0 %v1697_v14  ;;  %453 = vmatmul.mubr.f32.vlgmr.msra.gmra.mrb[2].mxu1 %v219_v20 }
  0x35   :  { %718 = vmatprep.mubr.f32.mxu1 %v1975_v4 }
  0x37   :  { %1700 = vmatpush1.bf16.msra.mxu0 %v1699_v19 }
  0x38   :  { %1702 = vmatprep.subr.bf16.mxu0 %v1701_v21 }
  0x3b   :  { %1704 = vmatpush1.bf16.msra.mxu0 %v1703_v26 }
  0x3c   :  { %1706 = vmatprep.subr.bf16.mxu0 %v1705_v27 }
  0x3f   :  { %1708 = vmatpush1.bf16.msra.mxu0 %v1707_v32 }
  0x40   :  { %1710 = vmatprep.subr.bf16.mxu0 %v1709_v33 }
  0x43   :  { %1712 = vmatpush1.bf16.msra.mxu0 %v1711_v38 }
  0x44   :  { %1714 = vmatprep.subr.bf16.mxu0 %v1713_v39 }
  0x47   :  { %1716 = vmatpush1.bf16.msra.mxu0 %v1715_v44 }
  0x48   :  { %1718 = vmatprep.subr.bf16.mxu0 %v1717_v45 }
  0x4b   :  { %1720 = vmatpush1.bf16.msra.mxu0 %v1719_v50 }
  0x4c   :  { %1722 = vmatprep.subr.bf16.mxu0 %v1721_v51 }
  0x4f   :  { %1724 = vmatpush1.bf16.msra.mxu0 %v1723_v54 }
  0x52   :  { %382 = vmatmul.mubr.f32.vlgmr.msra.gmra.mrb[2].mxu0 %v219_v20 }
  0x53   :  { %1289 = vmatprep.mubr.f32.mxu0 %v1975_v4 }
  0xe5   :  { %v2425_v55 = vpop.f32.mrb[0].mxu0 }
  0xe6   :  { %v2427_v56 = vpop.f32.mrb[0].mxu1  ;;  %582 = vrot.lane.b32.xlu1 %v2425_v55, %s1977_s25  ;;  %560 = vrot.lane.b32.xlu0 %v2425_v55, %s1978_s26  ;;  %v2433_v57 = vpop.f32.mrb[1].mxu0 }
  0xe7   :  { %v1868_v58 = vpack.i.bf16 %v2427_v56, %v2433_v57  ;;  %v1576_v59 = vpop.f32.mrb[1].mxu1 }
  0xea   :  { %604 = vrot.lane.b32.xlu1 %v2425_v55, %s1979_s3  ;;  %571 = vrot.lane.b32.xlu0 %v2425_v55, %s1980_s2 }
  0xee   :  { %593 = vrot.lane.b32.xlu0 %v2425_v55, %s1981_s27  ;;  %1869 = vrot.lane.b32.xlu1 %v1868_v58, %s1980_s2 }
  0xf2   :  { %1874 = vrot.lane.b32.xlu1 %v1868_v58, %s1977_s25  ;;  %1864 = vrot.lane.b32.xlu0 %v1868_v58, %s1978_s26 }
  0xf6   :  { %1884 = vrot.lane.b32.xlu1 %v1868_v58, %s1979_s3  ;;  %615 = vrot.lane.b32.xlu0 %v2425_v55, %s1982_s0 }
  0xfa   :  { %1894 = vrot.lane.b32.xlu1 %v1868_v58, %s1983_s28  ;;  %1879 = vrot.lane.b32.xlu0 %v1868_v58, %s1981_s27 }
  0xfe   :  { %626 = vrot.lane.b32.xlu1 %v2425_v55, %s1983_s28  ;;  %1889 = vrot.lane.b32.xlu0 %v1868_v58, %s1982_s0 }
 0x102   :  { %641 = vrot.lane.b32.xlu1 %v2427_v56, %s1984_s1  ;;  %639 = vrot.lane.b32.xlu0 %v2433_v57, %s1984_s1 }
 0x106   :  { %637 = vrot.lane.b32.xlu0 %v2425_v55, %s1984_s1 }
 0x107   :  { %v1526_v60 = vpop.f32.mrb[2].mxu1 }
 0x108   :  { %v1527_v61 = vpop.f32.mrb[3].mxu1 }
 0x109   :  { %v2460_v62 = vadd.f32 %v1527_v61, %v1526_v60  ;;  %v649_v60 = vld [vmem:[%s2740_s5] sm:$0xff] }
 0x125   :  { %v2462_v63 = vpop.f32.mrb[2].mxu0 }
 0x126   :  { %473 = vrot.lane.b32.xlu1 %v2462_v63, %s1980_s2  ;;  %461 = vrot.lane.b32.xlu0 %v2462_v63, %s1978_s26  ;;  %v2468_v0 = vpop.f32.mrb[3].mxu0 }
 0x127   :  { %v1908_v1 = vpack.i.bf16 %v2460_v62, %v2468_v0 }
 0x12a   :  { %497 = vrot.lane.b32.xlu1 %v2462_v63, %s1981_s27  ;;  %485 = vrot.lane.b32.xlu0 %v2462_v63, %s1977_s25 }
 0x12e   :  { %521 = vrot.lane.b32.xlu1 %v2462_v63, %s1982_s0  ;;  %509 = vrot.lane.b32.xlu0 %v2462_v63, %s1979_s3 }
 0x132   :  { %1909 = vrot.lane.b32.xlu0 %v1908_v1, %s1977_s25  ;;  %1899 = vrot.lane.b32.xlu1 %v1908_v1, %s1978_s26 }
 0x136   :  { %1919 = vrot.lane.b32.xlu0 %v1908_v1, %s1979_s3  ;;  %1904 = vrot.lane.b32.xlu1 %v1908_v1, %s1980_s2 }
 0x13a   :  { %1929 = vrot.lane.b32.xlu0 %v1908_v1, %s1983_s28  ;;  %1914 = vrot.lane.b32.xlu1 %v1908_v1, %s1981_s27 }
 0x13e   :  { %533 = vrot.lane.b32.xlu0 %v2462_v63, %s1983_s28  ;;  %1924 = vrot.lane.b32.xlu1 %v1908_v1, %s1982_s0 }
 0x142   :  { %549 = vrot.lane.b32.xlu0 %v2460_v62, %s1984_s1  ;;  %547 = vrot.lane.b32.xlu1 %v2468_v0, %s1984_s1 }
 0x146   :  { %545 = vrot.lane.b32.xlu1 %v2462_v63, %s1984_s1 }
 0x158   :  { %v583_v2 = vpop.permute.xlu1 %582  ;;  %v561_v5 = vpop.permute.xlu0 %560 }
 0x15c   :  { %v605_v6 = vpop.permute.xlu1 %604  ;;  %v572_v7 = vpop.permute.xlu0 %571 }
 0x160   :  { %v594_v8 = vpop.permute.xlu0 %593  ;;  %v2495_v9 = vpop.permute.xlu1 %1869 }
 0x161   :  { %v1872_v16 = vunpack.i.h.bf16 %v2495_v9  ;;  %v1871_v17 = vunpack.i.l.bf16 %v2495_v9 }
 0x163   :  { %v578_v27 = vsel %vm479_vm5, %v1871_v17, %v1872_v16  ;;  %v577_v32 = vsel %vm479_vm5, %v572_v7, %v1871_v17 }
 0x164   :  { %v2497_v10 = vpop.permute.xlu1 %1874  ;;  %v2499_v11 = vpop.permute.xlu0 %1864 }
 0x165   :  { %v1877_v12 = vunpack.i.h.bf16 %v2497_v10  ;;  %v1876_v13 = vunpack.i.l.bf16 %v2497_v10  ;;  %v1867_v14 = vunpack.i.h.bf16 %v2499_v11  ;;  %v1866_v15 = vunpack.i.l.bf16 %v2499_v11 }
 0x167   :  { %v566_v18 = vsel %vm467_vm4, %v561_v5, %v1866_v15  ;;  %v567_v22 = vsel %vm467_vm4, %v1866_v15, %v1867_v14  ;;  %v589_v23 = vsel %vm491_vm3, %v1876_v13, %v1877_v12  ;;  %v588_v28 = vsel %vm491_vm3, %v583_v2, %v1876_v13 }
 0x168   :  { %v1759_v19 = vpack.c.bf16 %v566_v18, %v2425_v55  ;;  %v2509_v20 = vpop.permute.xlu1 %1884  ;;  %v616_v21 = vpop.permute.xlu0 %615  ;;  %v1757_v24 = vpack.c.bf16 %v567_v22, %v2433_v57  ;;  %v1761_v29 = vpack.c.bf16 %v589_v23, %v578_v27  ;;  %v1763_v35 = vpack.c.bf16 %v588_v28, %v577_v32 }
 0x169   :  { %v1887_v25 = vunpack.i.h.bf16 %v2509_v20  ;;  %v1886_v26 = vunpack.i.l.bf16 %v2509_v20  ;;  %v1774_v61 = vpack.c.bf16 %v1867_v14, %v2427_v56  ;;  %v1777_v1 = vpack.c.bf16 %v1877_v12, %v1872_v16 }
 0x16a   :  { %1758 = vmatprep.subr.bf16.mxu1 %v1757_v24 }
 0x16b   :  { %1760 = vmatpush1.bf16.msra.mxu1 %v1759_v19  ;;  %v610_v36 = vsel %vm515_vm6, %v605_v6, %v1886_v26  ;;  %v611_v37 = vsel %vm515_vm6, %v1886_v26, %v1887_v25 }
 0x16c   :  { %v1895_v30 = vpop.permute.xlu1 %1894  ;;  %v1880_v31 = vpop.permute.xlu0 %1879  ;;  %1762 = vmatprep.subr.bf16.mxu1 %v1761_v29 }
 0x16d   :  { %v1882_v33 = vunpack.i.h.bf16 %v1880_v31  ;;  %v1881_v34 = vunpack.i.l.bf16 %v1880_v31  ;;  %v1897_v38 = vunpack.i.h.bf16 %v1895_v30  ;;  %v1896_v39 = vunpack.i.l.bf16 %v1895_v30 }
 0x16f   :  { %v599_v40 = vsel %vm503_vm7, %v594_v8, %v1881_v34  ;;  %v600_v41 = vsel %vm503_vm7, %v1881_v34, %v1882_v33  ;;  %1764 = vmatpush1.bf16.msra.mxu1 %v1763_v35  ;;  %v633_v51 = vsel %vm539_vm8, %v1896_v39, %v1897_v38  ;;  %v1780_v56 = vpack.c.bf16 %v1887_v25, %v1882_v33 }
 0x170   :  { %v1767_v42 = vpack.c.bf16 %v610_v36, %v599_v40  ;;  %v627_v43 = vpop.permute.xlu1 %626  ;;  %v1890_v44 = vpop.permute.xlu0 %1889  ;;  %v1765_v45 = vpack.c.bf16 %v611_v37, %v600_v41 }
 0x171   :  { %v1892_v46 = vunpack.i.h.bf16 %v1890_v44  ;;  %v1891_v47 = vunpack.i.l.bf16 %v1890_v44  ;;  %v632_v48 = vsel %vm539_vm8, %v627_v43, %v1896_v39 }
 0x172   :  { %1766 = vmatprep.subr.bf16.mxu1 %v1765_v45 }
 0x173   :  { %v621_v49 = vsel %vm527_vm9, %v616_v21, %v1891_v47  ;;  %v622_v50 = vsel %vm527_vm9, %v1891_v47, %v1892_v46  ;;  %1768 = vmatpush1.bf16.msra.mxu1 %v1767_v42  ;;  %v1783_v2 = vpack.c.bf16 %v1897_v38, %v1892_v46 }
 0x174   :  { %v1771_v52 = vpack.c.bf16 %v632_v48, %v621_v49  ;;  %v640_v53 = vpop.permute.xlu0 %639  ;;  %v1769_v54 = vpack.c.bf16 %v633_v51, %v622_v50  ;;  %v642_v55 = vpop.permute.xlu1 %641 }
 0x175   :  { %v644_v58 = vsel %vm551_vm10, %v640_v53, %v642_v55 }
 0x176   :  { %1770 = vmatprep.subr.bf16.mxu1 %v1769_v54 }
 0x177   :  { %1772 = vmatpush1.bf16.msra.mxu1 %v1771_v52 }
 0x178   :  { %v638_v57 = vpop.permute.xlu0 %637  ;;  %670 = vmatprep.subr.mxu1 %v644_v58 }
 0x179   :  { %v643_v59 = vsel %vm551_vm10, %v638_v57, %v640_v53 }
 0x17b   :  { %671 = vmatpush1.msra.mxu1 %v643_v59  ;;  %v648_v59 = vld [vmem:[%s2741_s4] sm:$0xff] }
 0x17c   :  { %1773 = vmatprep.subr.bf16.mxu1 %v1974_v3  ;;  %1476 = vmatmul.mubr.msk.f32.vlgmr.msra.gmra.mrb[4].mxu1 %vm650_vm11, %v649_v60 }
 0x17d   :  { %1775 = vmatpush3.bf16.msra.mxu1 %v1774_v61  ;;  %1595 = vmatprep.mubr.msk.f32.mxu1 %vm1976_vm0, %v1975_v4 }
 0x17e   :  { %1776 = vmatprep.subr.bf16.mxu1 %v1974_v3 }
 0x181   :  { %1778 = vmatpush3.bf16.msra.mxu1 %v1777_v1 }
 0x182   :  { %1779 = vmatprep.subr.bf16.mxu1 %v1974_v3 }
 0x185   :  { %1781 = vmatpush3.bf16.msra.mxu1 %v1780_v56  ;;  %v949_v56 = vlaneseq }
 0x186   :  { %1782 = vmatprep.subr.bf16.mxu1 %v1974_v3 }
 0x189   :  { %1784 = vmatpush3.bf16.msra.mxu1 %v1783_v2  ;;  %v950_v2 = vshrl.u32 %v949_v56, 7 }
 0x18a   :  { %1593 = vmatprep.subr.mxu1 %v1975_v4 }
 0x18d   :  { %1594 = vmatpush3.msra.mxu1 %v642_v55 }
 0x18e   :  { %1596 = vmatmul.mubr.msk.f32.vlgmr.msra.gmra.mrb[6].mxu1 %vm650_vm11, %v649_v60 }
 0x18f   :  { %862 = vmatprep.mubr.f32.mxu1 %v1975_v4 }
 0x198   :  { %v474_v5 = vpop.permute.xlu1 %473  ;;  %v462_v6 = vpop.permute.xlu0 %461 }
 0x19c   :  { %v498_v7 = vpop.permute.xlu1 %497  ;;  %v486_v8 = vpop.permute.xlu0 %485 }
 0x1a0   :  { %v522_v9 = vpop.permute.xlu1 %521  ;;  %v510_v10 = vpop.permute.xlu0 %509 }
 0x1a4   :  { %v2555_v11 = vpop.permute.xlu0 %1909  ;;  %v1900_v12 = vpop.permute.xlu1 %1899 }
 0x1a5   :  { %v1902_v13 = vunpack.i.h.bf16 %v1900_v12  ;;  %v1901_v14 = vunpack.i.l.bf16 %v1900_v12  ;;  %v1912_v15 = vunpack.i.h.bf16 %v2555_v11  ;;  %v1911_v16 = vunpack.i.l.bf16 %v2555_v11 }
 0x1a7   :  { %v468_v17 = vsel %vm467_vm4, %v462_v6, %v1901_v14  ;;  %v469_v18 = vsel %vm467_vm4, %v1901_v14, %v1902_v13  ;;  %v492_v27 = vsel %vm491_vm3, %v486_v8, %v1911_v16  ;;  %v1802_v60 = vpack.c.bf16 %v1902_v13, %v2460_v62 }
 0x1a8   :  { %v1787_v19 = vpack.c.bf16 %v468_v17, %v2462_v63  ;;  %v1920_v20 = vpop.permute.xlu0 %1919  ;;  %v1905_v21 = vpop.permute.xlu1 %1904  ;;  %v1785_v22 = vpack.c.bf16 %v469_v18, %v2468_v0  ;;  %v493_v63 = vsel %vm491_vm3, %v1911_v16, %v1912_v15  ;;  %v955_v6 = vsub.s32 1, %v950_v2 }
 0x1a9   :  { %v1907_v23 = vunpack.i.h.bf16 %v1905_v21  ;;  %v1906_v24 = vunpack.i.l.bf16 %v1905_v21  ;;  %v1922_v25 = vunpack.i.h.bf16 %v1920_v20  ;;  %v1921_v26 = vunpack.i.l.bf16 %v1920_v20 }
 0x1aa   :  { %1786 = vmatprep.subr.bf16.mxu1 %v1785_v22 }
 0x1ab   :  { %v480_v28 = vsel %vm479_vm5, %v474_v5, %v1906_v24  ;;  %1788 = vmatpush1.bf16.msra.mxu1 %v1787_v19  ;;  %v481_v29 = vsel %vm479_vm5, %v1906_v24, %v1907_v23  ;;  %v516_v35 = vsel %vm515_vm6, %v510_v10, %v1921_v26  ;;  %v517_v36 = vsel %vm515_vm6, %v1921_v26, %v1922_v25 }
 0x1ac   :  { %v1791_v30 = vpack.c.bf16 %v492_v27, %v480_v28  ;;  %v1930_v31 = vpop.permute.xlu0 %1929  ;;  %v1915_v32 = vpop.permute.xlu1 %1914  ;;  %v1789_v0 = vpack.c.bf16 %v493_v63, %v481_v29  ;;  %v1805_v61 = vpack.c.bf16 %v1912_v15, %v1907_v23  ;;  %v951_v5 = vsub.s32 0, %v950_v2 }
 0x1ad   :  { %v1917_v33 = vunpack.i.h.bf16 %v1915_v32  ;;  %v1916_v34 = vunpack.i.l.bf16 %v1915_v32  ;;  %v1932_v37 = vunpack.i.h.bf16 %v1930_v31  ;;  %v1931_v38 = vunpack.i.l.bf16 %v1930_v31 }
 0x1ae   :  { %1790 = vmatprep.subr.bf16.mxu1 %v1789_v0  ;;  %v959_v15 = vsub.s32 2, %v950_v2 }
 0x1af   :  { %v504_v39 = vsel %vm503_vm7, %v498_v7, %v1916_v34  ;;  %1792 = vmatpush1.bf16.msra.mxu1 %v1791_v30  ;;  %v505_v40 = vsel %vm503_vm7, %v1916_v34, %v1917_v33  ;;  %v541_v50 = vsel %vm539_vm8, %v1931_v38, %v1932_v37  ;;  %v1808_v1 = vpack.c.bf16 %v1922_v25, %v1917_v33  ;;  %v41_v7 = vld [vmem:[%s2742_s11] sm:$0x7] }
 0x1b0   :  { %v1795_v41 = vpack.c.bf16 %v516_v35, %v504_v39  ;;  %v534_v42 = vpop.permute.xlu0 %533  ;;  %v1925_v43 = vpop.permute.xlu1 %1924  ;;  %v1793_v44 = vpack.c.bf16 %v517_v36, %v505_v40  ;;  %v2597_v10 = vrot.slane %v41_v7, %v951_v5  ;;  %v2607_v18 = vrot.slane %v41_v7, %v959_v15 }
 0x1b1   :  { %v1927_v45 = vunpack.i.h.bf16 %v1925_v43  ;;  %v1926_v46 = vunpack.i.l.bf16 %v1925_v43  ;;  %v540_v47 = vsel %vm539_vm8, %v534_v42, %v1931_v38  ;;  %v1985_v33 = vmov 839922192  }
 0x1b2   :  { %1794 = vmatprep.subr.bf16.mxu1 %v1793_v44  ;;  %v997_v34 = vunpack.c.l.s4 %v1985_v33 }
 0x1b3   :  { %v528_v48 = vsel %vm527_vm9, %v522_v9, %v1926_v46  ;;  %1796 = vmatpush1.bf16.msra.mxu1 %v1795_v41  ;;  %v529_v49 = vsel %vm527_vm9, %v1926_v46, %v1927_v45  ;;  %v1811_v62 = vpack.c.bf16 %v1932_v37, %v1927_v45 }
 0x1b4   :  { %v1799_v51 = vpack.c.bf16 %v540_v47, %v528_v48  ;;  %v550_v52 = vpop.permute.xlu0 %549  ;;  %v548_v53 = vpop.permute.xlu1 %547  ;;  %v1797_v54 = vpack.c.bf16 %v541_v50, %v529_v49  ;;  %v998_v36 = vunpack.c.0.s8 %v997_v34 }
 0x1b5   :  { %v553_v55 = vsel %vm551_vm10, %v548_v53, %v550_v52 }
 0x1b6   :  { %1798 = vmatprep.subr.bf16.mxu1 %v1797_v54  ;;  %v1001_v40 = vsub.s32 %v998_v36, %v950_v2 }
 0x1b7   :  { %1800 = vmatpush1.bf16.msra.mxu1 %v1799_v51 }
 0x1b8   :  { %v546_v57 = vpop.permute.xlu1 %545  ;;  %814 = vmatprep.subr.mxu1 %v553_v55 }
 0x1b9   :  { %v552_v58 = vsel %vm551_vm10, %v546_v57, %v548_v53 }
 0x1bb   :  { %815 = vmatpush1.msra.mxu1 %v552_v58 }
 0x1bc   :  { %1478 = vmatmul.mubr.msk.f32.vlgmr.msra.gmra.mrb[4].mxu1 %vm650_vm11, %v648_v59  ;;  %1801 = vmatprep.subr.bf16.mxu1 %v1974_v3 }
 0x1bd   :  { %1803 = vmatpush3.bf16.msra.mxu1 %v1802_v60  ;;  %1616 = vmatprep.mubr.msk.f32.mxu1 %vm1976_vm0, %v1975_v4  ;;  %vm1386_vm0 = vcmask 261120  }
 0x1be   :  { %1804 = vmatprep.subr.bf16.mxu1 %v1974_v3 }
 0x1c1   :  { %1806 = vmatpush3.bf16.msra.mxu1 %v1805_v61 }
 0x1c2   :  { %1807 = vmatprep.subr.bf16.mxu1 %v1974_v3 }
 0x1c5   :  { %1809 = vmatpush3.bf16.msra.mxu1 %v1808_v1 }
 0x1c6   :  { %1810 = vmatprep.subr.bf16.mxu1 %v1974_v3  ;;  %v2599_v3 = vrot.slane %v41_v7, %v955_v6 }
 0x1c8   :  { %v2603_v13 = vcombine.low %v2597_v10, %v2599_v3 }
 0x1c9   :  { %1812 = vmatpush3.bf16.msra.mxu1 %v1811_v62 }
 0x1ca   :  { %1614 = vmatprep.subr.mxu1 %v1975_v4 }
 0x1cd   :  { %1615 = vmatpush3.msra.mxu1 %v550_v52 }
 0x1ce   :  { %1617 = vmatmul.mubr.msk.f32.vlgmr.msra.gmra.mrb[6].mxu1 %vm650_vm11, %v648_v59 }
 0x28f   :  { %v864_v8 = vpop.f32.mrb[4].mxu1 }
 0x290   :  { %v866_v9 = vpop.f32.mrb[5].mxu1 }
 0x291   :  { %v942_v11 = vcombine.low %v864_v8, %v866_v9  ;;  %v943_v12 = vcombine.high %v864_v8, %v866_v9  ;;  %v1986_v8 = vmov 0   ;;  %v1041_v9 = vld [vmem:[%s2743_s8] sm:$0xf]  ;;  %s1987_s8 = smov 19  }
 0x292   :  { %1933 = vset.pattern.permute.xlu1 %v1986_v8  ;;  %1934 = vset.pattern.permute.xlu0 %v1986_v8 }
 0x293   :  { %v964_v14 = vmul.f32 %v2603_v13, %v942_v11  ;;  %v966_v16 = vmul.f32 %v2603_v13, %v943_v12 }
 0x295   :  { %v970_v17 = vcombine.high %v964_v14, %v964_v14  ;;  %v971_v19 = vcombine.high %v966_v16, %v966_v16  ;;  %v975_v25 = vsel %vm974_vm12, %v964_v14, 0.0  ;;  %v983_v63 = vsel %vm974_vm12, %v966_v16, 0.0 }
 0x297   :  { %v976_v20 = vsel %vm974_vm12, %v970_v17, 0.0  ;;  %v984_v26 = vsel %vm974_vm12, %v971_v19, 0.0 }
 0x298   :  { %v977_v27 = vadd.f32 %v976_v20, %v975_v25  ;;  %v985_v31 = vadd.f32 %v984_v26, %v983_v63  ;;  %v1040_v20 = vld [vmem:[%s2744_s7] sm:$0xf] }
 0x2a1   :  { %v935_v21 = vpop.f32.mrb[6].mxu1 }
 0x2a2   :  { %v944_v22 = vcombine.high %v935_v21, %v935_v21  ;;  %v965_v23 = vmul.f32 %v2607_v18, %v935_v21  ;;  %v1618_v24 = vpop.f32.mrb[7].mxu1 }
 0x2a4   :  { %v979_v28 = vsel %vm978_vm13, %v965_v23, 0.0  ;;  %v967_v29 = vmul.f32 %v2607_v18, %v944_v22 }
 0x2a5   :  { %v980_v30 = vadd.f32 %v979_v28, %v977_v27 }
 0x2a6   :  { %v986_v32 = vsel %vm978_vm13, %v967_v29, 0.0 }
 0x2a7   :  { %981 = vadd.xlane.f32.xlu0 %v980_v30  ;;  %v987_v0 = vadd.f32 %v986_v32, %v985_v31 }
 0x2a9   :  { %988 = vadd.xlane.f32.xlu1 %v987_v0 }
 0x334   :  { %v982_v35 = vpop.xlane.xlu0 %981 }
 0x335   :  { %v990_v38 = vsel %vm974_vm12, %v982_v35, 0.0 }
 0x336   :  { %v989_v37 = vpop.xlane.xlu1 %988 }
 0x337   :  { %v991_v39 = vsel %vm974_vm12, %v989_v37, 0.0 }
 0x338   :  { %v992_v41 = vadd.f32 %v991_v39, %v990_v38 }
 0x33a   :  { %v994_v42 = vmul.f32 0.001953125, %v992_v41 }
 0x33c   :  { %v1002_v43 = vrot.slane %v994_v42, %v1001_v40 }
 0x33e   :  { %v1004_v44 = vsub.f32 %v942_v11, %v1002_v43  ;;  %v1005_v45 = vsub.f32 %v935_v21, %v1002_v43  ;;  %v1006_v46 = vsub.f32 %v943_v12, %v1002_v43  ;;  %v1007_v49 = vsub.f32 %v944_v22, %v1002_v43 }
 0x340   :  { %v1008_v47 = vmul.f32 %v1004_v44, %v1004_v44  ;;  %v1009_v48 = vmul.f32 %v1005_v45, %v1005_v45  ;;  %v1010_v50 = vmul.f32 %v1006_v46, %v1006_v46  ;;  %v1011_v55 = vmul.f32 %v1007_v49, %v1007_v49 }
 0x342   :  { %v1012_v51 = vmul.f32 %v1008_v47, %v2603_v13  ;;  %v1014_v52 = vmul.f32 %v1010_v50, %v2603_v13  ;;  %v1013_v53 = vmul.f32 %v1009_v48, %v2607_v18  ;;  %v1015_v62 = vmul.f32 %v1011_v55, %v2607_v18 }
 0x344   :  { %v1018_v54 = vcombine.high %v1012_v51, %v1012_v51  ;;  %v1019_v57 = vcombine.high %v1014_v52, %v1014_v52  ;;  %v1022_v58 = vsel %vm974_vm12, %v1012_v51, 0.0  ;;  %v1025_v1 = vsel %vm978_vm13, %v1013_v53, 0.0 }
 0x345   :  { %v1029_v56 = vsel %vm974_vm12, %v1014_v52, 0.0  ;;  %v1032_v6 = vsel %vm978_vm13, %v1015_v62, 0.0 }
 0x346   :  { %v1023_v59 = vsel %vm974_vm12, %v1018_v54, 0.0  ;;  %v1030_v60 = vsel %vm974_vm12, %v1019_v57, 0.0 }
 0x347   :  { %v1024_v61 = vadd.f32 %v1023_v59, %v1022_v58  ;;  %v1031_v5 = vadd.f32 %v1030_v60, %v1029_v56 }
 0x349   :  { %v1026_v2 = vadd.f32 %v1025_v1, %v1024_v61  ;;  %v1033_v7 = vadd.f32 %v1032_v6, %v1031_v5 }
 0x34b   :  { %1027 = vadd.xlane.f32.xlu0 %v1026_v2 }
 0x34f   :  { %1034 = vadd.xlane.f32.xlu0 %v1033_v7 }
 0x365   :  { %1063 = vperm.xlu0 %1934, %v1041_v9  }
 0x3d8   :  { %v1028_v11 = vpop.xlane.xlu0 %1027 }
 0x3d9   :  { %v1036_v14 = vsel %vm974_vm12, %v1028_v11, 0.0 }
 0x3dc   :  { %v1035_v12 = vpop.xlane.xlu0 %1034 }
 0x3dd   :  { %v1037_v15 = vsel %vm974_vm12, %v1035_v12, 0.0 }
 0x3de   :  { %v1038_v16 = vadd.f32 %v1037_v15, %v1036_v14 }
 0x3e0   :  { %v1039_v17 = vmul.f32 0.001953125, %v1038_v16 }
 0x3e2   :  { %v1042_v19 = vadd.f32 1e-05, %v1039_v17 }
 0x3e4   :  { %1970 = vrsqrt.f32 %v1042_v19  ;;  %v1064_v23 = vpop.permute.xlu0 %1063 }
 0x3e5   :  { %v1071_v26 = vrot.slane %v1064_v23, %v1001_v40 }
 0x3ee   :  { %v1971_v21 = vpop.eup %1970 }
 0x3ef   :  { %v1044_v22 = vmul.f32 %v1971_v21, %v1040_v20 }
 0x3f1   :  { %1047 = vperm.xlu1 %1933, %v1044_v22  }
 0x470   :  { %v1048_v24 = vpop.permute.xlu1 %1047 }
 0x471   :  { %v1055_v25 = vrot.slane %v1048_v24, %v1001_v40 }
 0x473   :  { %v1058_v27 = vmul.f32 %v1055_v25, %v1005_v45  ;;  %v1060_v28 = vmul.f32 %v1055_v25, %v1007_v49  ;;  %v1057_v30 = vmul.f32 %v1055_v25, %v1004_v44  ;;  %v1059_v32 = vmul.f32 %v1055_v25, %v1006_v46 }
 0x475   :  { %v1074_v29 = vadd.f32 %v1071_v26, %v1058_v27  ;;  %v1076_v63 = vadd.f32 %v1071_v26, %v1060_v28  ;;  %v1073_v34 = vadd.f32 %v1071_v26, %v1057_v30  ;;  %v1075_v37 = vadd.f32 %v1071_v26, %v1059_v32 }
 0x477   :  { %v1078_v31 = vmax.f32 %v1074_v29, 0.0  ;;  %v1080_v33 = vmax.f32 %v1076_v63, 0.0  ;;  %v1077_v36 = vmax.f32 %v1073_v34, 0.0  ;;  %v1079_v39 = vmax.f32 %v1075_v37, 0.0 }
 0x479   :  { %v1082_v0 = vmul.f32 %v1078_v31, %v2607_v18  ;;  %v1084_v35 = vmul.f32 %v1080_v33, %v2607_v18  ;;  %v1081_v38 = vmul.f32 %v1077_v36, %v2603_v13  ;;  %v1083_v41 = vmul.f32 %v1079_v39, %v2603_v13 }
 0x47b   :  { %1095 = vrot.lane.b32.xlu1 %v1082_v0, %s1987_s8  ;;  %v1089_v40 = vcombine.high %v1081_v38, %v1081_v38  ;;  %v1090_v42 = vcombine.high %v1083_v41, %v1083_v41 }
 0x47f   :  { %1101 = vrot.lane.b32.xlu1 %v1084_v35, %s1987_s8 }
 0x483   :  { %1091 = vrot.lane.b32.xlu1 %v1081_v38, %s1987_s8 }
 0x487   :  { %1093 = vrot.lane.b32.xlu1 %v1089_v40, %s1987_s8 }
 0x48b   :  { %1099 = vrot.lane.b32.xlu1 %v1090_v42, %s1987_s8 }
 0x48f   :  { %1097 = vrot.lane.b32.xlu1 %v1083_v41, %s1987_s8 }
 0x4ed   :  { %v1096_v43 = vpop.permute.xlu1 %1095 }
 0x4f1   :  { %v1102_v44 = vpop.permute.xlu1 %1101 }
 0x4f5   :  { %v1092_v45 = vpop.permute.xlu1 %1091 }
 0x4f6   :  { %v1112_v49 = vsel %vm1103_vm14, 0.0, %v1092_v45 }
 0x4f9   :  { %v1094_v46 = vpop.permute.xlu1 %1093 }
 0x4fa   :  { %v1105_v53 = vsel %vm1103_vm14, %v1094_v46, %v1096_v43  ;;  %v1104_v54 = vsel %vm1103_vm14, %v1092_v45, %v1094_v46 }
 0x4fb   :  { %v1115_v58 = vsel %vm1114_vm15, %v1105_v53, 0.0 }
 0x4fd   :  { %v1100_v47 = vpop.permute.xlu1 %1099 }
 0x4fe   :  { %v1107_v52 = vsel %vm1103_vm14, %v1100_v47, %v1102_v44 }
 0x4ff   :  { %v1116_v55 = vsel %vm1114_vm15, %v1107_v52, 0.0 }
 0x500   :  { %v2645_v59 = vcombine.low %v1115_v58, %v1116_v55 }
 0x501   :  { %v1098_v48 = vpop.permute.xlu1 %1097 }
 0x502   :  { %v1113_v50 = vsel %vm1103_vm14, 0.0, %v1098_v48  ;;  %v1106_v13 = vsel %vm1103_vm14, %v1098_v48, %v1100_v47 }
 0x503   :  { %v1480_v51 = vcombine.low %v1112_v49, %v1113_v50  ;;  %v1481_v57 = vcombine.low %v1104_v54, %v1106_v13  ;;  %v1217_v54 = vld [vmem:[%s2745_s6] sm:$0xff] }
 0x505   :  { %1140 = vrot.lane.b32.xlu0 %v1480_v51, %s1980_s2  ;;  %1129 = vrot.lane.b32.xlu1 %v1480_v51, %s1978_s26  ;;  %v1940_v60 = vpack.i.bf16 %v2645_v59, %v1481_v57 }
 0x509   :  { %1162 = vrot.lane.b32.xlu0 %v1480_v51, %s1981_s27  ;;  %1151 = vrot.lane.b32.xlu1 %v1480_v51, %s1977_s25 }
 0x50d   :  { %1184 = vrot.lane.b32.xlu0 %v1480_v51, %s1982_s0  ;;  %1173 = vrot.lane.b32.xlu1 %v1480_v51, %s1979_s3 }
 0x511   :  { %1941 = vrot.lane.b32.xlu0 %v1940_v60, %s1980_s2  ;;  %1936 = vrot.lane.b32.xlu1 %v1940_v60, %s1978_s26 }
 0x515   :  { %1951 = vrot.lane.b32.xlu0 %v1940_v60, %s1981_s27  ;;  %1946 = vrot.lane.b32.xlu1 %v1940_v60, %s1977_s25 }
 0x519   :  { %1961 = vrot.lane.b32.xlu0 %v1940_v60, %s1982_s0  ;;  %1956 = vrot.lane.b32.xlu1 %v1940_v60, %s1979_s3 }
 0x51d   :  { %1208 = vrot.lane.b32.xlu0 %v1481_v57, %s1984_s1  ;;  %1966 = vrot.lane.b32.xlu1 %v1940_v60, %s1983_s28  ;;  %v1218_v60 = vld [vmem:[%s2745_s6 + $0x8] sm:$0xff] }
 0x521   :  { %1206 = vrot.lane.b32.xlu0 %v1480_v51, %s1984_s1  ;;  %1195 = vrot.lane.b32.xlu1 %v1480_v51, %s1983_s28 }
 0x525   :  { %1210 = vrot.lane.b32.xlu1 %v2645_v59, %s1984_s1 }
 0x577   :  { %v1141_v61 = vpop.permute.xlu0 %1140  ;;  %v1130_v1 = vpop.permute.xlu1 %1129 }
 0x57b   :  { %v1163_v62 = vpop.permute.xlu0 %1162  ;;  %v1152_v56 = vpop.permute.xlu1 %1151 }
 0x57f   :  { %v1185_v2 = vpop.permute.xlu0 %1184  ;;  %v1174_v5 = vpop.permute.xlu1 %1173 }
 0x583   :  { %v2662_v6 = vpop.permute.xlu0 %1941  ;;  %v1937_v7 = vpop.permute.xlu1 %1936 }
 0x584   :  { %v1939_v8 = vunpack.i.h.bf16 %v1937_v7  ;;  %v1938_v9 = vunpack.i.l.bf16 %v1937_v7  ;;  %v1944_v11 = vunpack.i.h.bf16 %v2662_v6  ;;  %v1943_v12 = vunpack.i.l.bf16 %v2662_v6 }
 0x586   :  { %v1135_v14 = vsel %vm467_vm4, %v1130_v1, %v1938_v9  ;;  %v1136_v15 = vsel %vm467_vm4, %v1938_v9, %v1939_v8  ;;  %v1146_v25 = vsel %vm479_vm5, %v1141_v61, %v1943_v12  ;;  %v1147_v27 = vsel %vm479_vm5, %v1943_v12, %v1944_v11 }
 0x587   :  { %v1815_v16 = vpack.c.bf16 %v1135_v14, %v1480_v51  ;;  %v1952_v17 = vpop.permute.xlu0 %1951  ;;  %v1947_v19 = vpop.permute.xlu1 %1946  ;;  %v1813_v20 = vpack.c.bf16 %v1136_v15, %v1481_v57  ;;  %v1829_v55 = vpack.c.bf16 %v1939_v8, %v2645_v59 }
 0x588   :  { %v1949_v21 = vunpack.i.h.bf16 %v1947_v19  ;;  %v1948_v22 = vunpack.i.l.bf16 %v1947_v19  ;;  %v1954_v23 = vunpack.i.h.bf16 %v1952_v17  ;;  %v1953_v24 = vunpack.i.l.bf16 %v1952_v17 }
 0x589   :  { %1814 = vmatprep.subr.bf16.mxu0 %v1813_v20 }
 0x58a   :  { %v1157_v26 = vsel %vm491_vm3, %v1152_v56, %v1948_v22  ;;  %1816 = vmatpush1.bf16.msra.mxu0 %v1815_v16  ;;  %v1158_v28 = vsel %vm491_vm3, %v1948_v22, %v1949_v21  ;;  %v1168_v33 = vsel %vm503_vm7, %v1163_v62, %v1953_v24  ;;  %v1169_v34 = vsel %vm503_vm7, %v1953_v24, %v1954_v23 }
 0x58b   :  { %v1819_v29 = vpack.c.bf16 %v1157_v26, %v1146_v25  ;;  %v1962_v63 = vpop.permute.xlu0 %1961  ;;  %v1957_v30 = vpop.permute.xlu1 %1956  ;;  %v1817_v31 = vpack.c.bf16 %v1158_v28, %v1147_v27  ;;  %v1833_v58 = vpack.c.bf16 %v1949_v21, %v1944_v11 }
 0x58c   :  { %v1959_v32 = vunpack.i.h.bf16 %v1957_v30  ;;  %v1958_v0 = vunpack.i.l.bf16 %v1957_v30  ;;  %v1964_v35 = vunpack.i.h.bf16 %v1962_v63  ;;  %v1963_v36 = vunpack.i.l.bf16 %v1962_v63 }
 0x58d   :  { %1818 = vmatprep.subr.bf16.mxu0 %v1817_v31 }
 0x58e   :  { %v1179_v37 = vsel %vm515_vm6, %v1174_v5, %v1958_v0  ;;  %1820 = vmatpush1.bf16.msra.mxu0 %v1819_v29  ;;  %v1180_v38 = vsel %vm515_vm6, %v1958_v0, %v1959_v32  ;;  %v1191_v45 = vsel %vm527_vm9, %v1963_v36, %v1964_v35  ;;  %v1190_v49 = vsel %vm527_vm9, %v1185_v2, %v1963_v36 }
 0x58f   :  { %v1823_v39 = vpack.c.bf16 %v1179_v37, %v1168_v33  ;;  %v1967_v40 = vpop.permute.xlu1 %1966  ;;  %v1821_v41 = vpack.c.bf16 %v1180_v38, %v1169_v34  ;;  %v1209_v44 = vpop.permute.xlu0 %1208  ;;  %v1837_v61 = vpack.c.bf16 %v1959_v32, %v1954_v23 }
 0x590   :  { %v1969_v42 = vunpack.i.h.bf16 %v1967_v40  ;;  %v1968_v43 = vunpack.i.l.bf16 %v1967_v40 }
 0x591   :  { %1822 = vmatprep.subr.bf16.mxu0 %v1821_v41 }
 0x592   :  { %1824 = vmatpush1.bf16.msra.mxu0 %v1823_v39  ;;  %v1202_v46 = vsel %vm539_vm8, %v1968_v43, %v1969_v42  ;;  %v1841_v59 = vpack.c.bf16 %v1969_v42, %v1964_v35 }
 0x593   :  { %v1196_v47 = vpop.permute.xlu1 %1195  ;;  %v1825_v48 = vpack.c.bf16 %v1202_v46, %v1191_v45  ;;  %v1207_v52 = vpop.permute.xlu0 %1206 }
 0x594   :  { %v1201_v50 = vsel %vm539_vm8, %v1196_v47, %v1968_v43  ;;  %v1212_v57 = vsel %vm551_vm10, %v1207_v52, %v1209_v44  ;;  %v1429_v47 = vld [vmem:[%s2746_s10] sm:$0xff] }
 0x595   :  { %v1827_v51 = vpack.c.bf16 %v1201_v50, %v1190_v49  ;;  %1826 = vmatprep.subr.bf16.mxu0 %v1825_v48  ;;  %v1428_v50 = vld [vmem:[%s2747_s9] sm:$0xff] }
 0x597   :  { %v1211_v13 = vpop.permute.xlu1 %1210  ;;  %1828 = vmatpush1.bf16.msra.mxu0 %v1827_v51 }
 0x598   :  { %v1213_v53 = vsel %vm551_vm10, %v1209_v44, %v1211_v13 }
 0x599   :  { %1241 = vmatprep.subr.mxu0 %v1213_v53 }
 0x59b   :  { %1242 = vmatpush1.msra.mxu0 %v1212_v57 }
 0x59c   :  { %1482 = vmatmul.mubr.msk.f32.vlgmr.msra.gmra.mrb[4].mxu0 %vm650_vm11, %v1217_v54  ;;  %1830 = vmatprep.subr.bf16.mxu0 %v1829_v55 }
 0x59d   :  { %1832 = vmatpush3.bf16.msra.mxu0 %v1829_v55  ;;  %1295 = vmatprep.mubr.f32.mxu0 %v1975_v4 }
 0x59e   :  { %1834 = vmatprep.subr.bf16.mxu0 %v1833_v58 }
 0x5a0   :  { %1483 = vmatmul.mubr.msk.f32.gmra.mrb[6].mxu0 %vm650_vm11, %v1218_v60 }
 0x5a1   :  { %1836 = vmatpush3.bf16.msra.mxu0 %v1833_v58  ;;  %1637 = vmatprep.mubr.msk.f32.mxu0 %vm650_vm11, %v1217_v54 }
 0x5a2   :  { %1838 = vmatprep.subr.bf16.mxu0 %v1837_v61 }
 0x5a5   :  { %1840 = vmatpush3.bf16.msra.mxu0 %v1837_v61 }
 0x5a6   :  { %1842 = vmatprep.subr.bf16.mxu0 %v1841_v59 }
 0x5a9   :  { %1844 = vmatpush3.bf16.msra.mxu0 %v1841_v59 }
 0x5aa   :  { %1635 = vmatprep.subr.mxu0 %v1211_v13 }
 0x5ad   :  { %1636 = vmatpush3.msra.mxu0 %v1211_v13 }
 0x5ae   :  { %1638 = vmatmul.mubr.msk.f32.vlgmr.msra.gmra.mrb[8].mxu0 %vm650_vm11, %v1218_v60 }
 0x66f   :  { %v1291_v4 = vpop.f32.mrb[4].mxu0 }
 0x670   :  { %v1379_v1 = vmul.f32 %v1291_v4, %v2597_v10  ;;  %v1293_v62 = vpop.f32.mrb[5].mxu0 }
 0x671   :  { %v1380_v56 = vmul.f32 %v1293_v62, %v2599_v3 }
 0x673   :  { %v1297_v2 = vpop.f32.mrb[6].mxu0  ;;  %v1385_v5 = vadd.f32 %v1380_v56, %v1379_v1 }
 0x674   :  { %v1382_v6 = vmul.f32 %v1297_v2, %v2597_v10  ;;  %v1299_v7 = vpop.f32.mrb[7].mxu0 }
 0x675   :  { %v1383_v8 = vmul.f32 %v1299_v7, %v2599_v3 }
 0x677   :  { %v1391_v9 = vadd.f32 %v1383_v8, %v1382_v6 }
 0x681   :  { %v1639_v11 = vpop.f32.mrb[8].mxu0 }
 0x682   :  { %v1384_v12 = vmul.f32 %v1639_v11, %v2607_v18  ;;  %v1368_v14 = vpop.f32.mrb[9].mxu0 }
 0x683   :  { %v1381_v15 = vmul.f32 %v1368_v14, %v2607_v18 }
 0x684   :  { %v1392_v16 = vsel %vm1386_vm0, %v1384_v12, 0.0 }
 0x685   :  { %v1393_v17 = vadd.f32 %v1392_v16, %v1391_v9  ;;  %v1387_v19 = vsel %vm1386_vm0, %v1381_v15, 0.0 }
 0x686   :  { %v1388_v20 = vadd.f32 %v1387_v19, %v1385_v5 }
 0x687   :  { %1394 = vadd.xlane.f32.xlu0 %v1393_v17 }
 0x688   :  { %1389 = vadd.xlane.f32.xlu1 %v1388_v20 }
 0x714   :  { %v1395_v21 = vpop.xlane.xlu0 %1394 }
 0x715   :  { %v1390_v22 = vpop.xlane.xlu1 %1389 }
 0x716   :  { %v1396_v23 = vadd.f32 %v1395_v21, %v1390_v22 }
 0x718   :  { %v1397_v24 = vmul.f32 0.001953125, %v1396_v23 }
 0x71a   :  { %v1401_v25 = vsub.f32 %v1297_v2, %v1397_v24  ;;  %v1402_v26 = vsub.f32 %v1299_v7, %v1397_v24  ;;  %v1403_v27 = vsub.f32 %v1639_v11, %v1397_v24  ;;  %v1398_v28 = vsub.f32 %v1291_v4, %v1397_v24 }
 0x71b   :  { %v1399_v29 = vsub.f32 %v1293_v62, %v1397_v24  ;;  %v1400_v63 = vsub.f32 %v1368_v14, %v1397_v24 }
 0x71c   :  { %v1407_v30 = vmul.f32 %v1401_v25, %v1401_v25  ;;  %v1408_v31 = vmul.f32 %v1402_v26, %v1402_v26  ;;  %v1409_v32 = vmul.f32 %v1403_v27, %v1403_v27  ;;  %v1404_v0 = vmul.f32 %v1398_v28, %v1398_v28 }
 0x71d   :  { %v1405_v33 = vmul.f32 %v1399_v29, %v1399_v29  ;;  %v1406_v34 = vmul.f32 %v1400_v63, %v1400_v63 }
 0x71e   :  { %v1413_v35 = vmul.f32 %v1407_v30, %v2597_v10  ;;  %v1414_v36 = vmul.f32 %v1408_v31, %v2599_v3  ;;  %v1415_v37 = vmul.f32 %v1409_v32, %v2607_v18  ;;  %v1410_v38 = vmul.f32 %v1404_v0, %v2597_v10 }
 0x71f   :  { %v1411_v39 = vmul.f32 %v1405_v33, %v2599_v3  ;;  %v1412_v40 = vmul.f32 %v1406_v34, %v2607_v18 }
 0x720   :  { %v1421_v41 = vadd.f32 %v1414_v36, %v1413_v35  ;;  %v1422_v42 = vsel %vm1386_vm0, %v1415_v37, 0.0 }
 0x721   :  { %v1416_v43 = vadd.f32 %v1411_v39, %v1410_v38  ;;  %v1417_v44 = vsel %vm1386_vm0, %v1412_v40, 0.0 }
 0x722   :  { %v1423_v45 = vadd.f32 %v1422_v42, %v1421_v41 }
 0x723   :  { %v1418_v46 = vadd.f32 %v1417_v44, %v1416_v43 }
 0x724   :  { %1424 = vadd.xlane.f32.xlu1 %v1423_v45 }
 0x725   :  { %1419 = vadd.xlane.f32.xlu0 %v1418_v46 }
 0x735   :  { %1446 = vperm.xlu1 %1933, %v1429_v47  }
 0x7b1   :  { %v1425_v10 = vpop.xlane.xlu1 %1424 }
 0x7b2   :  { %v1420_v48 = vpop.xlane.xlu0 %1419 }
 0x7b3   :  { %v1426_v3 = vadd.f32 %v1425_v10, %v1420_v48 }
 0x7b5   :  { %v1427_v49 = vmul.f32 0.001953125, %v1426_v3  ;;  %v1447_v58 = vpop.permute.xlu1 %1446 }
 0x7b7   :  { %v1430_v18 = vadd.f32 1e-05, %v1427_v49 }
 0x7b9   :  { %1972 = vrsqrt.f32 %v1430_v18 }
 0x7c3   :  { %v1973_v51 = vpop.eup %1972 }
 0x7c4   :  { %v1432_v52 = vmul.f32 %v1973_v51, %v1428_v50 }
 0x7c6   :  { %1435 = vperm.xlu0 %1934, %v1432_v52  }
 0x845   :  { %v1436_v13 = vpop.permute.xlu0 %1435 }
 0x846   :  { %v1438_v53 = vmul.f32 %v1436_v13, %v1398_v28  ;;  %v1439_v54 = vmul.f32 %v1436_v13, %v1399_v29  ;;  %v1440_v55 = vmul.f32 %v1436_v13, %v1400_v63  ;;  %v1441_v57 = vmul.f32 %v1436_v13, %v1401_v25 }
 0x847   :  { %v1442_v60 = vmul.f32 %v1436_v13, %v1402_v26  ;;  %v1443_v61 = vmul.f32 %v1436_v13, %v1403_v27 }
 0x848   :  { %v1449_v59 = vadd.f32 %v1447_v58, %v1438_v53  ;;  %v1450_v4 = vadd.f32 %v1447_v58, %v1439_v54  ;;  %v1451_v1 = vadd.f32 %v1447_v58, %v1440_v55  ;;  %v1452_v62 = vadd.f32 %v1447_v58, %v1441_v57 }
 0x849   :  { %v1453_v56 = vadd.f32 %v1447_v58, %v1442_v60  ;;  %v1454_v2 = vadd.f32 %v1447_v58, %v1443_v61 }
 0x84a   :  { %v1455_v5 = vmax.f32 %v1449_v59, 0.0  ;;  %v1456_v6 = vmax.f32 %v1450_v4, 0.0  ;;  %v1457_v7 = vmax.f32 %v1451_v1, 0.0  ;;  %v1458_v8 = vmax.f32 %v1452_v62, 0.0 }
 0x84b   :  { %v1459_v9 = vmax.f32 %v1453_v56, 0.0  ;;  %v1460_v11 = vmax.f32 %v1454_v2, 0.0 }
 0x84c   :  { %1461 = vst [vmem:[%s2748_s12] sm:$0xff] %v1455_v5  ;;  %1462 = vst [vmem:[%s2748_s12 + $0x8] sm:$0xff] %v1456_v6 }
 0x84d   :  { %1463 = vst.msk [vmem:[%s2748_s12 + $0x10] sm:$0xff] %vm1386_vm0, %v1457_v7  ;;  %1464 = vst [vmem:[%s2748_s12 + $0x18] sm:$0xff] %v1458_v8 }
 0x84e   :  { %1465 = vst [vmem:[%s2748_s12 + $0x20] sm:$0xff] %v1459_v9  ;;  %1466 = vst.msk [vmem:[%s2748_s12 + $0x28] sm:$0xff] %vm1386_vm0, %v1460_v11 }

</bundles_post_ra>
